<compile_context>
chip_gen: v7x
topology: tpu7x:2x2x1
jax: 0.10.0
libtpu: 0.0.40
codegen_flags: <defaults>
</compile_context>

<pallas_src>
import functools

import jax
import jax.numpy as jnp
from jax.experimental import pallas as pl
from jax.experimental.pallas import tpu as pltpu


def _round_up(x, m):
    return ((x + m - 1) // m) * m


def _vq_kernel(z_ref, w_ref, hw2_ref, *rest, m_total, tm, tc, need_mask,
               has_dist_w):
    if has_dist_w:
        wd_ref, zq_ref, idx_ref, sse_ref = rest
    else:
        zq_ref, idx_ref, sse_ref = rest
        wd_ref = None

    i = pl.program_id(0)
    n_e = w_ref.shape[0]
    n_chunks = tm // tc

    w = w_ref[...]                                   # (n_e, D) f32, resident (exact lookup)
    hw2 = hw2_ref[...]                               # (1, n_e) 0.5*|e|^2, resident
    wd = wd_ref[...] if has_dist_w else w            # distance codebook (f32 or bf16)

    def chunk(c, sse):
        r0 = pl.multiple_of(c * tc, tc)
        z_c = z_ref[pl.ds(r0, tc), :]                # (tc, D)
        zf = z_c.astype(jnp.float32)

        # distance up to a row-constant: d_k = 0.5*|e_k|^2 - z.e_k
        # contraction over dim 1 of BOTH operands -> no per-step w transpose.
        zw = jax.lax.dot_general(
            z_c.astype(wd.dtype), wd,
            dimension_numbers=(((1,), (1,)), ((), ())),
            preferred_element_type=jnp.float32)      # (tc, n_e)
        d = hw2 - zw                                 # (tc, n_e)

        idx = jnp.argmin(d, axis=1).astype(jnp.int32)            # (tc,)

        # codebook lookup via one-hot MXU matmul (exact: f32 codebook, one 1.0/row)
        cols = jax.lax.broadcasted_iota(jnp.int32, (tc, n_e), 1)
        onehot = (idx[:, None] == cols).astype(jnp.float32)      # (tc, n_e)
        zq = jnp.dot(onehot, w, preferred_element_type=jnp.float32)  # (tc, D)

        zq_ref[pl.ds(r0, tc), :] = zq.astype(zq_ref.dtype)
        idx_ref[:, :, pl.ds(r0, tc)] = idx[None, None, :]        # lane-dense

        # per-tile partial sum((z_q - z)^2); NaN-safe mask for ragged padded rows
        diff = zq - zf
        sq = diff * diff
        if need_mask:
            rows = jax.lax.broadcasted_iota(jnp.int32, (tc, 1), 0)
            valid = (i * tm + r0 + rows) < m_total
            sq = jnp.where(valid, sq, 0.0)
        return sse + jnp.sum(sq)

    sse = jax.lax.fori_loop(0, n_chunks, chunk, jnp.float32(0.0), unroll=True)
    sse_ref[...] = jnp.full((1, 1, 1), sse, dtype=jnp.float32)


def vector_quantizer_forward(z, embedding_weight, beta=0.25, tm=1024,
                             row_chunk=256, dist_matmul_dtype=None):
    """Forward pass of VectorQuantizer (remap=None).

    z: (N, L, D) float32
    embedding_weight: (n_e, D) float32
    Returns (z_q, loss, (perplexity, min_encodings, min_encoding_indices)).
    """
    N, L, D = z.shape
    n_e, e_dim = embedding_weight.shape
    assert e_dim == D

    M = N * L
    # Effective row tile: big to amortize per-step overhead, but never larger
    # than (8-rounded) M so the single-tile demo shapes stay exact/un-ragged.
    tm_eff = max(8, min(tm, _round_up(M, 8)))
    # In-kernel row sub-chunk: keeps (rows, n_e) intermediates bounded.
    if row_chunk < tm_eff and tm_eff % row_chunk == 0:
        tc_eff = row_chunk
    else:
        tc_eff = tm_eff
    num_tiles = pl.cdiv(M, tm_eff)
    need_mask = (M % tm_eff) != 0            # ragged trailing block only

    z_flat = z.reshape(M, D)                 # no jnp.pad copy of z

    w32 = embedding_weight.astype(jnp.float32)
    half_w2 = (0.5 * jnp.sum(w32 * w32, axis=1))[None, :]        # (1, n_e)

    use_lowp = dist_matmul_dtype is not None
    inputs = (z_flat, w32, half_w2)
    if use_lowp:
        # distance-only codebook copy, cast ONCE in the wrapper (not per-step)
        inputs = inputs + (embedding_weight.astype(dist_matmul_dtype),)

    kernel = functools.partial(
        _vq_kernel, m_total=M, tm=tm_eff, tc=tc_eff, need_mask=need_mask,
        has_dist_w=use_lowp)

    # ---- VMEM budget (explicit, generation-safe) ----
    z_item = jnp.dtype(z.dtype).itemsize
    wd_item = jnp.dtype(dist_matmul_dtype).itemsize if use_lowp else 0
    resident_bytes = n_e * D * (4 + wd_item) + n_e * 4
    stream_bytes = 2 * (2 * tm_eff * D * z_item + tm_eff * 4 + 4)
    scratch_bytes = tc_eff * n_e * 3 * 4 + tc_eff * D * 2 * 4
    vmem_limit = int(min(
        max(32 << 20,
            2 * resident_bytes + stream_bytes + 2 * scratch_bytes + (4 << 20)),
        64 << 20))

    cost = pl.CostEstimate(
        flops=4 * M * n_e * D,               # distance GEMM + one-hot lookup GEMM
        transcendentals=0,
        bytes_accessed=(2 * M * D * z_item   # z in + zq out
                        + n_e * D * (4 + wd_item) + n_e * 4
                        + num_tiles * tm_eff * 4 + num_tiles * 4))

    def _build(single_buffer_residents):
        def resident_spec(shape):
            idx_map = lambda i: (0,) * len(shape)
            if single_buffer_residents:
                # constant index_map -> one VMEM copy is enough; halves resident VMEM
                return pl.BlockSpec(shape, idx_map, pipeline_mode=pl.Buffered(1))
            return pl.BlockSpec(shape, idx_map)

        in_specs = [
            pl.BlockSpec((tm_eff, D), lambda i: (i, 0)),
            resident_spec((n_e, D)),
            resident_spec((1, n_e)),
        ]
        if use_lowp:
            in_specs.append(resident_spec((n_e, D)))

        # TODO(synk): for very large n_e (v7x 64 MiB/TC), add a second grid axis
        # over the codebook with a running (min, argmin) carried in VMEM scratch.
        return pl.pallas_call(
            kernel,
            out_shape=(
                jax.ShapeDtypeStruct((M, D), z.dtype),
                jax.ShapeDtypeStruct((num_tiles, 1, tm_eff), jnp.int32),
                jax.ShapeDtypeStruct((num_tiles, 1, 1), jnp.float32),
            ),
            grid_spec=pltpu.PrefetchScalarGridSpec(
                num_scalar_prefetch=0,
                grid=(num_tiles,),
                in_specs=in_specs,
                out_specs=[
                    pl.BlockSpec((tm_eff, D), lambda i: (i, 0)),
                    pl.BlockSpec((1, 1, tm_eff), lambda i: (i, 0, 0)),
                    pl.BlockSpec((1, 1, 1), lambda i: (i, 0, 0)),
                ],
            ),
            compiler_params=pltpu.CompilerParams(
                dimension_semantics=("parallel",),   # tiles fully independent
                vmem_limit_bytes=vmem_limit,
            ),
            cost_estimate=cost,
        )

    try:
        zq_flat, idx_tiles, sse_tiles = _build(True)(*inputs)
    except Exception:
        # TODO(synk): pipeline_mode=pl.Buffered(1) unsupported on this JAX/Mosaic
        # version; fall back to default double-buffered resident blocks.
        zq_flat, idx_tiles, sse_tiles = _build(False)(*inputs)

    # loss forward value: beta*mean((sg[z_q]-z)^2) + mean((z_q-sg[z])^2)
    #                    == (1+beta)*mean((z_q-z)^2)
    # TODO(synk): for training, recompute the loss in JAX with PyTorch's
    # stop_gradient placement (custom_vjp); the in-kernel SSE gives forward only.
    mse = jnp.sum(sse_tiles) / jnp.float32(M * D)
    loss = (1.0 + beta) * mse

    zq = zq_flat.reshape(N, L, D)
    # straight-through estimator: forward value == z_q
    z_q = z + jax.lax.stop_gradient(zq - z)

    # TODO(synk): lane-dense (tm*D/128, 128) z_q slab output for D<128 not done;
    # the in-kernel relayout crossing (8,128) tiles needs benchmarking first.
    # TODO(synk): PyTorch returns int64 indices; int32 here (JAX default x32).
    # TODO(synk): remap / remap_to_used path not implemented (remap=None).
    min_encoding_indices = idx_tiles.reshape(-1)[:M]
    perplexity = None
    min_encodings = None
    return z_q, loss, (perplexity, min_encodings, min_encoding_indices)


if __name__ == "__main__":
    # small shapes consistent with forward: z (N, L, e_dim)
    N, L = 2, 64
    n_e, e_dim = 256, 32
    beta = 0.25

    key = jax.random.PRNGKey(0)
    k_z, k_w = jax.random.split(key)

    z = jax.random.normal(k_z, (N, L, e_dim), dtype=jnp.float32)
    # nn.Embedding weight init: uniform(-1/n_e, 1/n_e)
    embedding_weight = jax.random.uniform(
        k_w, (n_e, e_dim), dtype=jnp.float32, minval=-1.0 / n_e, maxval=1.0 / n_e
    )

    z_q, loss, (perp, min_enc, min_idx) = vector_quantizer_forward(
        z, embedding_weight, beta=beta
    )
    jax.block_until_ready((z_q, loss, min_idx))

    # ---- reference checks (robust to FP near-ties in the argmin) ----
    zf = z.reshape(-1, e_dim)
    d_ref = (
        jnp.sum(zf ** 2, axis=1, keepdims=True)
        + jnp.sum(embedding_weight ** 2, axis=1)[None, :]
        - 2.0 * jnp.dot(zf, embedding_weight.T,
                        precision=jax.lax.Precision.HIGHEST)
    )
    # 1) the selected code is (within tolerance) the nearest one
    d_min_ref = jnp.min(d_ref, axis=1)
    d_sel = jnp.take_along_axis(d_ref, min_idx[:, None], axis=1)[:, 0]
    assert bool(jnp.all(d_sel <= d_min_ref + 1e-5))
    # 2) z_q matches the codebook rows for the returned indices
    zq_from_idx = embedding_weight[min_idx].reshape(z.shape)
    assert jnp.allclose(z_q, zq_from_idx, atol=1e-5)
    # 3) loss forward value
    loss_ref = (1.0 + beta) * jnp.mean((zq_from_idx - z) ** 2)
    assert jnp.allclose(loss, loss_ref, atol=1e-5)
    # 4) indices match the pure-JAX argmin (allow rare FP tie flips)
    idx_ref = jnp.argmin(d_ref, axis=1).astype(jnp.int32)
    assert float(jnp.mean((min_idx == idx_ref).astype(jnp.float32))) >= 0.99

    print("KERNEL_OK")
</pallas_src>

<mosaic_0001>
module attributes {stable_mosaic.version = 11 : i64} {
  func.func @_vq_kernel(%arg0: i32, %arg1: memref<128x32xf32, #tpu.memory_space<vmem>>, %arg2: memref<256x32xf32, #tpu.memory_space<vmem>>, %arg3: memref<1x256xf32, #tpu.memory_space<vmem>>, %arg4: memref<128x32xf32, #tpu.memory_space<vmem>>, %arg5: memref<1x1x128xi32, #tpu.memory_space<vmem>>, %arg6: memref<1x1x1xf32, #tpu.memory_space<vmem>>) attributes {dimension_semantics = [#tpu.dimension_semantics<parallel>], iteration_bounds = array<i64: 1>, scalar_prefetch = 0 : i64, scratch_operands = 0 : i64, tpu.core_type = #tpu.core_type<tc>, window_params = [{transform_indices = @transform_0, window_bounds = array<i64: 128, 32>}, {pipeline_mode = #tpu.pipeline_mode<synchronous>, transform_indices = @transform_1, window_bounds = array<i64: 256, 32>}, {pipeline_mode = #tpu.pipeline_mode<synchronous>, transform_indices = @transform_2, window_bounds = array<i64: 1, 256>}, {transform_indices = @transform_3, window_bounds = array<i64: 128, 32>}, {transform_indices = @transform_4, window_bounds = array<i64: 1, 1, 128>}, {transform_indices = @transform_5, window_bounds = array<i64: 1, 1, 1>}]} {
    %c0 = arith.constant 0 : index
    %c0_0 = arith.constant 0 : index
    %0 = vector.load %arg2[%c0, %c0_0] : memref<256x32xf32, #tpu.memory_space<vmem>>, vector<256x32xf32>
    %c0_1 = arith.constant 0 : index
    %c0_2 = arith.constant 0 : index
    %1 = vector.load %arg3[%c0_1, %c0_2] : memref<1x256xf32, #tpu.memory_space<vmem>>, vector<1x256xf32>
    %cst = arith.constant 0.000000e+00 : f32
    %c0_i32 = arith.constant 0 : i32
    %c128_i32 = arith.constant 128 : i32
    %2 = arith.muli %c0_i32, %c128_i32 : i32
    %3 = tpu.assume_multiple %2, 128 : i32
    %4 = arith.index_cast %3 : i32 to index
    %c0_3 = arith.constant 0 : index
    %5 = vector.load %arg1[%4, %c0_3] : memref<128x32xf32, #tpu.memory_space<vmem>>, vector<128x32xf32>
    %cst_4 = arith.constant dense<0.000000e+00> : vector<128x256xf32>
    %6 = tpu.matmul %5, %0, %cst_4 {dimension_numbers = #tpu.dot_dimension_numbers<[1], [1], [0], [0], [0, 0, 1, 0], [], []>} : vector<128x32xf32>, vector<256x32xf32>, vector<128x256xf32> -> vector<128x256xf32>
    %7 = vector.broadcast %1 : vector<1x256xf32> to vector<128x256xf32>
    %8 = arith.subf %7, %6 : vector<128x256xf32>
    %9 = tpu.reduce_index %8 {axis = 1 : i32, kind = #tpu.reduction_kind<arg_min>} : vector<128x256xf32> -> vector<128xi32>
    %10 = tpu.iota {dimensions = array<i32: 1>} : vector<128x256xi32>
    %11 = vector.shape_cast %9 : vector<128xi32> to vector<128x1xi32>
    %12 = vector.broadcast %11 : vector<128x1xi32> to vector<128x256xi32>
    %13 = arith.cmpi eq, %12, %10 : vector<128x256xi32>
    %14 = arith.extui %13 : vector<128x256xi1> to vector<128x256xi32>
    %15 = arith.sitofp %14 : vector<128x256xi32> to vector<128x256xf32>
    %cst_5 = arith.constant dense<0.000000e+00> : vector<128x32xf32>
    %16 = tpu.matmul %15, %0, %cst_5 {dimension_numbers = #tpu.dot_dimension_numbers<[1], [0], [0], [1], [0, 0, 1, 1], [], []>} : vector<128x256xf32>, vector<256x32xf32>, vector<128x32xf32> -> vector<128x32xf32>
    %17 = arith.index_cast %3 : i32 to index
    %c0_6 = arith.constant 0 : index
    %18 = vector.load %arg4[%17, %c0_6] : memref<128x32xf32, #tpu.memory_space<vmem>>, vector<128x32xf32>
    tpu.vector_store %arg4[%17, %c0_6], %16 {strides = array<i32>} : memref<128x32xf32, #tpu.memory_space<vmem>>, vector<128x32xf32>,
    %19 = vector.shape_cast %9 : vector<128xi32> to vector<1x1x128xi32>
    %c0_7 = arith.constant 0 : index
    %c0_8 = arith.constant 0 : index
    %20 = arith.index_cast %3 : i32 to index
    %21 = vector.load %arg5[%c0_7, %c0_8, %20] : memref<1x1x128xi32, #tpu.memory_space<vmem>>, vector<1x1x128xi32>
    tpu.vector_store %arg5[%c0_7, %c0_8, %20], %19 {strides = array<i32>} : memref<1x1x128xi32, #tpu.memory_space<vmem>>, vector<1x1x128xi32>,
    %22 = arith.subf %16, %5 : vector<128x32xf32>
    %23 = arith.mulf %22, %22 : vector<128x32xf32>
    %24 = vector.shape_cast %23 : vector<128x32xf32> to vector<1x128x32xf32>
    %cst_9 = arith.constant dense<0.000000e+00> : vector<1xf32>
    %25 = vector.multi_reduction <add>, %24, %cst_9 [1, 2] : vector<1x128x32xf32> to vector<1xf32>
    %26 = vector.shape_cast %25 : vector<1xf32> to vector<1x1x1xf32>
    %27 = vector.extract %26[0, 0, 0] : f32 from vector<1x1x1xf32>
    %28 = arith.addf %cst, %27 : f32
    %c1_i32 = arith.constant 1 : i32
    %29 = vector.broadcast %28 : f32 to vector<1x1x1xf32>
    %c0_10 = arith.constant 0 : index
    %c0_11 = arith.constant 0 : index
    %c0_12 = arith.constant 0 : index
    %30 = vector.load %arg6[%c0_10, %c0_11, %c0_12] : memref<1x1x1xf32, #tpu.memory_space<vmem>>, vector<1x1x1xf32>
    tpu.vector_store %arg6[%c0_10, %c0_11, %c0_12], %29 {strides = array<i32>} : memref<1x1x1xf32, #tpu.memory_space<vmem>>, vector<1x1x1xf32>,
    return
  }
  func.func @transform_0(%arg0: i32) -> (i32, i32) {
    %c0_i32 = arith.constant 0 : i32
    %c0_i32_0 = arith.constant 0 : i32
    return %arg0, %c0_i32 : i32, i32
  }
  func.func @transform_1(%arg0: i32) -> (i32, i32) {
    %c0_i32 = arith.constant 0 : i32
    %c0_i32_0 = arith.constant 0 : i32
    %c0_i32_1 = arith.constant 0 : i32
    return %c0_i32, %c0_i32_0 : i32, i32
  }
  func.func @transform_2(%arg0: i32) -> (i32, i32) {
    %c0_i32 = arith.constant 0 : i32
    %c0_i32_0 = arith.constant 0 : i32
    %c0_i32_1 = arith.constant 0 : i32
    return %c0_i32, %c0_i32_0 : i32, i32
  }
  func.func @transform_3(%arg0: i32) -> (i32, i32) {
    %c0_i32 = arith.constant 0 : i32
    %c0_i32_0 = arith.constant 0 : i32
    return %arg0, %c0_i32 : i32, i32
  }
  func.func @transform_4(%arg0: i32) -> (i32, i32, i32) {
    %c0_i32 = arith.constant 0 : i32
    %c0_i32_0 = arith.constant 0 : i32
    %c0_i32_1 = arith.constant 0 : i32
    return %arg0, %c0_i32, %c0_i32_0 : i32, i32, i32
  }
  func.func @transform_5(%arg0: i32) -> (i32, i32, i32) {
    %c0_i32 = arith.constant 0 : i32
    %c0_i32_0 = arith.constant 0 : i32
    %c0_i32_1 = arith.constant 0 : i32
    return %arg0, %c0_i32, %c0_i32_0 : i32, i32, i32
  }
}

module attributes {stable_mosaic.version = 11 : i64} {
  func.func @_vq_kernel(%arg0: i32, %arg1: memref<128x32xf32, #tpu.memory_space<vmem>>, %arg2: memref<256x32xf32, #tpu.memory_space<vmem>>, %arg3: memref<1x256xf32, #tpu.memory_space<vmem>>, %arg4: memref<128x32xf32, #tpu.memory_space<vmem>>, %arg5: memref<1x1x128xi32, #tpu.memory_space<vmem>>, %arg6: memref<1x1x1xf32, #tpu.memory_space<vmem>>) attributes {dimension_semantics = [#tpu.dimension_semantics<parallel>], iteration_bounds = array<i64: 1>, scalar_prefetch = 0 : i64, scratch_operands = 0 : i64, tpu.core_type = #tpu.core_type<tc>, window_params = [{transform_indices = @transform_0, window_bounds = array<i64: 128, 32>}, {pipeline_mode = #tpu.pipeline_mode<synchronous>, transform_indices = @transform_1, window_bounds = array<i64: 256, 32>}, {pipeline_mode = #tpu.pipeline_mode<synchronous>, transform_indices = @transform_2, window_bounds = array<i64: 1, 256>}, {transform_indices = @transform_3, window_bounds = array<i64: 128, 32>}, {transform_indices = @transform_4, window_bounds = array<i64: 1, 1, 128>}, {transform_indices = @transform_5, window_bounds = array<i64: 1, 1, 1>}]} {
    %c0 = arith.constant 0 : index
    %c0_0 = arith.constant 0 : index
    %0 = vector.load %arg2[%c0, %c0_0] : memref<256x32xf32, #tpu.memory_space<vmem>>, vector<256x32xf32>
    %c0_1 = arith.constant 0 : index
    %c0_2 = arith.constant 0 : index
    %1 = vector.load %arg3[%c0_1, %c0_2] : memref<1x256xf32, #tpu.memory_space<vmem>>, vector<1x256xf32>
    %cst = arith.constant 0.000000e+00 : f32
    %c0_i32 = arith.constant 0 : i32
    %c128_i32 = arith.constant 128 : i32
    %2 = arith.muli %c0_i32, %c128_i32 : i32
    %3 = tpu.assume_multiple %2, 128 : i32
    %4 = arith.index_cast %3 : i32 to index
    %c0_3 = arith.constant 0 : index
    %5 = vector.load %arg1[%4, %c0_3] : memref<128x32xf32, #tpu.memory_space<vmem>>, vector<128x32xf32>
    %cst_4 = arith.constant dense<0.000000e+00> : vector<128x256xf32>
    %6 = tpu.matmul %5, %0, %cst_4 {dimension_numbers = #tpu.dot_dimension_numbers<[1], [1], [0], [0], [0, 0, 1, 0], [], []>} : vector<128x32xf32>, vector<256x32xf32>, vector<128x256xf32> -> vector<128x256xf32>
    %7 = vector.broadcast %1 : vector<1x256xf32> to vector<128x256xf32>
    %8 = arith.subf %7, %6 : vector<128x256xf32>
    %9 = tpu.reduce_index %8 {axis = 1 : i32, kind = #tpu.reduction_kind<arg_min>} : vector<128x256xf32> -> vector<128xi32>
    %10 = tpu.iota {dimensions = array<i32: 1>} : vector<128x256xi32>
    %11 = vector.shape_cast %9 : vector<128xi32> to vector<128x1xi32>
    %12 = vector.broadcast %11 : vector<128x1xi32> to vector<128x256xi32>
    %13 = arith.cmpi eq, %12, %10 : vector<128x256xi32>
    %14 = arith.extui %13 : vector<128x256xi1> to vector<128x256xi32>
    %15 = arith.sitofp %14 : vector<128x256xi32> to vector<128x256xf32>
    %cst_5 = arith.constant dense<0.000000e+00> : vector<128x32xf32>
    %16 = tpu.matmul %15, %0, %cst_5 {dimension_numbers = #tpu.dot_dimension_numbers<[1], [0], [0], [1], [0, 0, 1, 1], [], []>} : vector<128x256xf32>, vector<256x32xf32>, vector<128x32xf32> -> vector<128x32xf32>
    %17 = arith.index_cast %3 : i32 to index
    %c0_6 = arith.constant 0 : index
    %18 = vector.load %arg4[%17, %c0_6] : memref<128x32xf32, #tpu.memory_space<vmem>>, vector<128x32xf32>
    tpu.vector_store %arg4[%17, %c0_6], %16 {strides = array<i32>} : memref<128x32xf32, #tpu.memory_space<vmem>>, vector<128x32xf32>,
    %19 = vector.shape_cast %9 : vector<128xi32> to vector<1x1x128xi32>
    %c0_7 = arith.constant 0 : index
    %c0_8 = arith.constant 0 : index
    %20 = arith.index_cast %3 : i32 to index
    %21 = vector.load %arg5[%c0_7, %c0_8, %20] : memref<1x1x128xi32, #tpu.memory_space<vmem>>, vector<1x1x128xi32>
    tpu.vector_store %arg5[%c0_7, %c0_8, %20], %19 {strides = array<i32>} : memref<1x1x128xi32, #tpu.memory_space<vmem>>, vector<1x1x128xi32>,
    %22 = arith.subf %16, %5 : vector<128x32xf32>
    %23 = arith.mulf %22, %22 : vector<128x32xf32>
    %24 = vector.shape_cast %23 : vector<128x32xf32> to vector<1x128x32xf32>
    %cst_9 = arith.constant dense<0.000000e+00> : vector<1xf32>
    %25 = vector.multi_reduction <add>, %24, %cst_9 [1, 2] : vector<1x128x32xf32> to vector<1xf32>
    %26 = vector.shape_cast %25 : vector<1xf32> to vector<1x1x1xf32>
    %27 = vector.extract %26[0, 0, 0] : f32 from vector<1x1x1xf32>
    %28 = arith.addf %cst, %27 : f32
    %c1_i32 = arith.constant 1 : i32
    %29 = vector.broadcast %28 : f32 to vector<1x1x1xf32>
    %c0_10 = arith.constant 0 : index
    %c0_11 = arith.constant 0 : index
    %c0_12 = arith.constant 0 : index
    %30 = vector.load %arg6[%c0_10, %c0_11, %c0_12] : memref<1x1x1xf32, #tpu.memory_space<vmem>>, vector<1x1x1xf32>
    tpu.vector_store %arg6[%c0_10, %c0_11, %c0_12], %29 {strides = array<i32>} : memref<1x1x1xf32, #tpu.memory_space<vmem>>, vector<1x1x1xf32>,
    return
  }
  func.func @transform_0(%arg0: i32) -> (i32, i32) {
    %c0_i32 = arith.constant 0 : i32
    %c0_i32_0 = arith.constant 0 : i32
    return %arg0, %c0_i32 : i32, i32
  }
  func.func @transform_1(%arg0: i32) -> (i32, i32) {
    %c0_i32 = arith.constant 0 : i32
    %c0_i32_0 = arith.constant 0 : i32
    %c0_i32_1 = arith.constant 0 : i32
    return %c0_i32, %c0_i32_0 : i32, i32
  }
  func.func @transform_2(%arg0: i32) -> (i32, i32) {
    %c0_i32 = arith.constant 0 : i32
    %c0_i32_0 = arith.constant 0 : i32
    %c0_i32_1 = arith.constant 0 : i32
    return %c0_i32, %c0_i32_0 : i32, i32
  }
  func.func @transform_3(%arg0: i32) -> (i32, i32) {
    %c0_i32 = arith.constant 0 : i32
    %c0_i32_0 = arith.constant 0 : i32
    return %arg0, %c0_i32 : i32, i32
  }
  func.func @transform_4(%arg0: i32) -> (i32, i32, i32) {
    %c0_i32 = arith.constant 0 : i32
    %c0_i32_0 = arith.constant 0 : i32
    %c0_i32_1 = arith.constant 0 : i32
    return %arg0, %c0_i32, %c0_i32_0 : i32, i32, i32
  }
  func.func @transform_5(%arg0: i32) -> (i32, i32, i32) {
    %c0_i32 = arith.constant 0 : i32
    %c0_i32_0 = arith.constant 0 : i32
    %c0_i32_1 = arith.constant 0 : i32
    return %arg0, %c0_i32, %c0_i32_0 : i32, i32, i32
  }
}

</mosaic_0001>

<bundles_post_ra>
// kernel: tpu_custom_call.1
= control target key start
LH: loop header
LB: loop body
LE: loop exit
PB: predicated region body
PF: predicated region fallthrough
CT: control target
= control target key end

     0   :  { %11 = vsyncpa [#allocation3], 0  ;;  %vm2267_vm0 = vcmask 261120   ;;  %s2261_s0 = inlined_call_operand.vmem [shape: f32[128,32], index: 0, kind: input, shape index: {}]   ;;  %s2262_s1 = inlined_call_operand.vmem [shape: f32[256,32], index: 1, kind: input, shape index: {}]   ;;  %s2263_s2 = inlined_call_operand.vmem [shape: f32[1,256], index: 2, kind: input, shape index: {}]   ;;  %s2264_s3 = inlined_call_operand.vmem [shape: f32[128,32], index: 3, kind: output, shape index: {0}]   ;;  %s2265_s4 = inlined_call_operand.hbm [shape: s32[1,1,128], index: 4, kind: output, shape index: {1}]   ;;  %s2266_s5 = inlined_call_operand.hbm [shape: f32[1,1,1], index: 5, kind: output, shape index: {2}]  }
   0x1   :  { %v35_v0 = vld [vmem:[%s2262_s1 + $0x80] sm:$0xff]  ;;  %v36_v1 = vld [vmem:[%s2262_s1 + $0x88] sm:$0xff]  ;;  %vm1472_vm1 = vmpackc.low %vm2267_vm0, %vm2267_vm0 }
   0x2   :  { %v19_v2 = vld [vmem:[%s2262_s1] sm:$0xff]  ;;  %v1279_v3 = vpack.c.bf16 %v36_v1, %v35_v0  ;;  %v20_v5 = vld [vmem:[%s2262_s1 + $0x8] sm:$0xff]  ;;  %v37_v6 = vld [vmem:[%s2262_s1 + $0x90] sm:$0xff] }
   0x3   :  { %v1282_v7 = vpack.c.bf16 %v20_v5, %v19_v2  ;;  %v38_v8 = vld [vmem:[%s2262_s1 + $0x98] sm:$0xff]  ;;  %v21_v10 = vld [vmem:[%s2262_s1 + $0x10] sm:$0xff]  ;;  %v39_v12 = vld [vmem:[%s2262_s1 + $0xa0] sm:$0xff] }
   0x4   :  { %1281 = vmatprep.subr.msk.bf16.mxu0 %vm1472_vm1, %v1279_v3  ;;  %v1285_v9 = vpack.c.bf16 %v38_v8, %v37_v6  ;;  %v22_v11 = vld [vmem:[%s2262_s1 + $0x18] sm:$0xff]  ;;  %1328 = vmatprep.subr.bf16.mxu1 %v1279_v3  ;;  %v40_v13 = vld [vmem:[%s2262_s1 + $0xa8] sm:$0xff]  ;;  %v23_v16 = vld [vmem:[%s2262_s1 + $0x20] sm:$0xff] }
   0x5   :  { %1284 = vmatpush3.bf16.xpose.msk.msra.mxu0 %vm1472_vm1, %v1282_v7  ;;  %1330 = vmatpush3.bf16.msra.mxu1 %v1282_v7  ;;  %v1288_v14 = vpack.c.bf16 %v22_v11, %v21_v10  ;;  %v1291_v15 = vpack.c.bf16 %v40_v13, %v39_v12  ;;  %v24_v17 = vld [vmem:[%s2262_s1 + $0x28] sm:$0xff]  ;;  %v41_v18 = vld [vmem:[%s2262_s1 + $0xb0] sm:$0xff]  ;;  %v42_v19 = vld [vmem:[%s2262_s1 + $0xb8] sm:$0xff] }
   0x6   :  { %1287 = vmatprep.subr.msk.bf16.mxu0 %vm1472_vm1, %v1285_v9  ;;  %1332 = vmatprep.subr.bf16.mxu1 %v1285_v9  ;;  %v1294_v20 = vpack.c.bf16 %v24_v17, %v23_v16  ;;  %v1518_v21 = vld [vmem:[%s2261_s0] sm:$0xff]  ;;  %v1297_v22 = vpack.c.bf16 %v42_v19, %v41_v18  ;;  %v25_v23 = vld [vmem:[%s2262_s1 + $0x30] sm:$0xff]  ;;  %v26_v24 = vld [vmem:[%s2262_s1 + $0x38] sm:$0xff] }
   0x7   :  { %1167 = vmatprep.mubr.msk.f32.mxu0 %vm2267_vm0, %v1518_v21  ;;  %v43_v25 = vld [vmem:[%s2262_s1 + $0xc0] sm:$0xff]  ;;  %v44_v26 = vld [vmem:[%s2262_s1 + $0xc8] sm:$0xff]  ;;  %v1300_v27 = vpack.c.bf16 %v26_v24, %v25_v23 }
   0x8   :  { %v1303_v28 = vpack.c.bf16 %v44_v26, %v43_v25  ;;  %v27_v29 = vld [vmem:[%s2262_s1 + $0x40] sm:$0xff]  ;;  %v28_v30 = vld [vmem:[%s2262_s1 + $0x48] sm:$0xff] }
   0x9   :  { %1334 = vmatpush3.bf16.msra.mxu1 %v1288_v14 }
   0xa   :  { %1336 = vmatprep.subr.bf16.mxu1 %v1291_v15 }
   0xd   :  { %1290 = vmatpush3.bf16.xpose.msk.msra.mxu0 %vm1472_vm1, %v1288_v14  ;;  %1338 = vmatpush3.bf16.msra.mxu1 %v1294_v20 }
   0xe   :  { %1293 = vmatprep.subr.msk.bf16.mxu0 %vm1472_vm1, %v1291_v15  ;;  %1340 = vmatprep.subr.bf16.mxu1 %v1297_v22 }
   0xf   :  { %12 = vsyncpa [#allocation5], 0  ;;  %v45_v31 = vld [vmem:[%s2262_s1 + $0xd0] sm:$0xff]  ;;  %v46_v32 = vld [vmem:[%s2262_s1 + $0xd8] sm:$0xff]  ;;  %v1306_v33 = vpack.c.bf16 %v28_v30, %v27_v29  ;;  %v375_v1 = vlaneseq  ;;  %s1429_s16 = smov [#allocation2]  }
  0x10   :  { %v1309_v34 = vpack.c.bf16 %v46_v32, %v45_v31  ;;  %v29_v35 = vld [vmem:[%s2262_s1 + $0x50] sm:$0xff]  ;;  %v30_v36 = vld [vmem:[%s2262_s1 + $0x58] sm:$0xff]  ;;  %v47_v37 = vld [vmem:[%s2262_s1 + $0xe0] sm:$0xff]  ;;  %s999_s17 = sshll.u32 %s1429_s16, 4  ;;  %s1000_s17 = int_to_ptr.vmem [resolvable:$true] %s999_s17 }
  0x11   :  { %1342 = vmatpush3.bf16.msra.mxu1 %v1300_v27  ;;  %v48_v38 = vld [vmem:[%s2262_s1 + $0xe8] sm:$0xff]  ;;  %v1312_v39 = vpack.c.bf16 %v30_v36, %v29_v35  ;;  %v31_v41 = vld [vmem:[%s2262_s1 + $0x60] sm:$0xff]  ;;  %v49_v43 = vld [vmem:[%s2262_s1 + $0xf0] sm:$0xff]  ;;  %v1740_v2 = vshrl.u32 %v375_v1, 7  ;;  %s1380_s18 = scalar_lea.vmem %s1000_s17, 16  ;;  %s1384_s19 = scalar_lea.vmem %s1000_s17, 32 }
  0x12   :  { %1344 = vmatprep.subr.bf16.mxu1 %v1303_v28  ;;  %v1315_v40 = vpack.c.bf16 %v48_v38, %v47_v37  ;;  %v32_v42 = vld [vmem:[%s2262_s1 + $0x68] sm:$0xff]  ;;  %v50_v44 = vld [vmem:[%s2262_s1 + $0xf8] sm:$0xff]  ;;  %v33_v47 = vld [vmem:[%s2262_s1 + $0x70] sm:$0xff]  ;;  %p1381_p0 = scmp.ne.s32.totalorder %s1000_s17, %s1380_s18  ;;  %p1385_p1 = scmp.lt.s32.totalorder %s1000_s17, %s1000_s17 }
  0x13   :  { %v1318_v45 = vpack.c.bf16 %v32_v42, %v31_v41  ;;  %v1321_v46 = vpack.c.bf16 %v50_v44, %v49_v43  ;;  %v34_v48 = vld [vmem:[%s2262_s1 + $0x78] sm:$0xff]  ;;  %v1605_v50 = vld [vmem:[%s2261_s0 + $0x8] sm:$0xff]  ;;  %v1614_v51 = vld [vmem:[%s2261_s0 + $0x10] sm:$0xff]  ;;  %v377_v3 = vsub.s32 0, %v1740_v2  ;;  %v381_v5 = vsub.s32 1, %v1740_v2  ;;  %p1386_p2 = scmp.lt.s32.totalorder %s1384_s19, %s1380_s18 }
  0x14   :  { %v1324_v49 = vpack.c.bf16 %v34_v48, %v33_v47  ;;  %v1623_v52 = vld [vmem:[%s2261_s0 + $0x18] sm:$0xff]  ;;  %v1632_v53 = vld [vmem:[%s2261_s0 + $0x20] sm:$0xff]  ;;  %v1641_v54 = vld [vmem:[%s2261_s0 + $0x28] sm:$0xff] }
  0x15   :  { %1296 = vmatpush3.bf16.xpose.msk.msra.mxu0 %vm1472_vm1, %v1294_v20  ;;  %1346 = vmatpush3.bf16.msra.mxu1 %v1306_v33  ;;  %v1650_v55 = vld [vmem:[%s2261_s0 + $0x30] sm:$0xff]  ;;  %v1659_v56 = vld [vmem:[%s2261_s0 + $0x38] sm:$0xff]  ;;  %v1668_v57 = vld [vmem:[%s2261_s0 + $0x40] sm:$0xff]  ;;  %p1387_p3 = por %p1386_p2, %p1385_p1 }
  0x16   :  { %1299 = vmatprep.subr.msk.bf16.mxu0 %vm1472_vm1, %v1297_v22  ;;  %1348 = vmatprep.subr.bf16.mxu1 %v1309_v34  ;;  %v1677_v58 = vld [vmem:[%s2261_s0 + $0x48] sm:$0xff]  ;;  %v1686_v59 = vld [vmem:[%s2261_s0 + $0x50] sm:$0xff]  ;;  %v1695_v60 = vld [vmem:[%s2261_s0 + $0x58] sm:$0xff] }
  0x17   :  { %v1704_v61 = vld [vmem:[%s2261_s0 + $0x60] sm:$0xff]  ;;  %v1713_v62 = vld [vmem:[%s2261_s0 + $0x68] sm:$0xff]  ;;  %v1722_v63 = vld [vmem:[%s2261_s0 + $0x70] sm:$0xff]  ;;  %p1388_p4 = pnand %p1387_p3, %p1381_p0 }
  0x18   :  { %v1731_v0 = vld [vmem:[%s2261_s0 + $0x78] sm:$0xff]  ;;  %v51_v4 = vld [vmem:[%s2263_s2] sm:$0x3] }
  0x19   :  { %1350 = vmatpush3.bf16.msra.mxu1 %v1312_v39  ;;  %v1747_v6 = vrot.slane %v51_v4, %v377_v3  ;;  %v1749_v7 = vrot.slane %v51_v4, %v381_v5 }
  0x1a   :  { %1352 = vmatprep.subr.bf16.mxu1 %v1315_v40 }
  0x1d   :  { %1302 = vmatpush3.bf16.xpose.msk.msra.mxu0 %vm1472_vm1, %v1300_v27  ;;  %1354 = vmatpush3.bf16.msra.mxu1 %v1318_v45 }
  0x1e   :  { %1305 = vmatprep.subr.msk.bf16.mxu0 %vm1472_vm1, %v1303_v28  ;;  %1356 = vmatprep.subr.bf16.mxu1 %v1321_v46 }
  0x21   :  { %1358 = vmatpush3.bf16.msra.mxu1 %v1324_v49 }
  0x25   :  { %1308 = vmatpush3.bf16.xpose.msk.msra.mxu0 %vm1472_vm1, %v1306_v33 }
  0x26   :  { %1311 = vmatprep.subr.msk.bf16.mxu0 %vm1472_vm1, %v1309_v34 }
  0x2d   :  { %1314 = vmatpush3.bf16.xpose.msk.msra.mxu0 %vm1472_vm1, %v1312_v39 }
  0x2e   :  { %1317 = vmatprep.subr.msk.bf16.mxu0 %vm1472_vm1, %v1315_v40 }
  0x35   :  { %1320 = vmatpush3.bf16.xpose.msk.msra.mxu0 %vm1472_vm1, %v1318_v45 }
  0x36   :  { %1323 = vmatprep.subr.msk.bf16.mxu0 %vm1472_vm1, %v1321_v46 }
  0x3d   :  { %1326 = vmatpush3.bf16.xpose.msk.msra.mxu0 %vm1472_vm1, %v1324_v49 }
  0x44   :  { %1168 = vmatmul.mubr.msk.f32.vlgmr.msra.gmra.mrb[0].mxu0 %vm2267_vm0, %v1518_v21 }
  0x45   :  { %1169 = vmatprep.mubr.msk.f32.mxu0 %vm2267_vm0, %v1605_v50 }
  0x48   :  { %1170 = vmatmul.mubr.msk.f32.gmra.mrb[2].mxu0 %vm2267_vm0, %v1605_v50 }
  0x49   :  { %1171 = vmatprep.mubr.msk.f32.mxu0 %vm2267_vm0, %v1614_v51 }
  0x4c   :  { %1172 = vmatmul.mubr.msk.f32.gmra.mrb[4].mxu0 %vm2267_vm0, %v1614_v51 }
  0x4d   :  { %1173 = vmatprep.mubr.msk.f32.mxu0 %vm2267_vm0, %v1623_v52 }
  0x50   :  { %1174 = vmatmul.mubr.msk.f32.gmra.mrb[6].mxu0 %vm2267_vm0, %v1623_v52 }
  0x51   :  { %1175 = vmatprep.mubr.msk.f32.mxu0 %vm2267_vm0, %v1632_v53 }
  0x54   :  { %1176 = vmatmul.mubr.msk.f32.gmra.mrb[8].mxu0 %vm2267_vm0, %v1632_v53 }
  0x55   :  { %1177 = vmatprep.mubr.msk.f32.mxu0 %vm2267_vm0, %v1641_v54 }
  0x58   :  { %1178 = vmatmul.mubr.msk.f32.gmra.mrb[10].mxu0 %vm2267_vm0, %v1641_v54 }
  0x59   :  { %1179 = vmatprep.mubr.msk.f32.mxu0 %vm2267_vm0, %v1650_v55 }
  0x5c   :  { %1180 = vmatmul.mubr.msk.f32.gmra.mrb[12].mxu0 %vm2267_vm0, %v1650_v55 }
  0x5d   :  { %1181 = vmatprep.mubr.msk.f32.mxu0 %vm2267_vm0, %v1659_v56 }
  0x60   :  { %1182 = vmatmul.mubr.msk.f32.gmra.mrb[14].mxu0 %vm2267_vm0, %v1659_v56 }
  0x61   :  { %1183 = vmatprep.mubr.msk.f32.mxu0 %vm2267_vm0, %v1668_v57 }
  0x64   :  { %1184 = vmatmul.mubr.msk.f32.gmra.mrb[16].mxu0 %vm2267_vm0, %v1668_v57 }
  0x65   :  { %1185 = vmatprep.mubr.msk.f32.mxu0 %vm2267_vm0, %v1677_v58 }
  0x68   :  { %1186 = vmatmul.mubr.msk.f32.gmra.mrb[18].mxu0 %vm2267_vm0, %v1677_v58 }
  0x69   :  { %1187 = vmatprep.mubr.msk.f32.mxu0 %vm2267_vm0, %v1686_v59 }
  0x6c   :  { %1188 = vmatmul.mubr.msk.f32.gmra.mrb[20].mxu0 %vm2267_vm0, %v1686_v59 }
  0x6d   :  { %1189 = vmatprep.mubr.msk.f32.mxu0 %vm2267_vm0, %v1695_v60 }
  0x70   :  { %1190 = vmatmul.mubr.msk.f32.gmra.mrb[22].mxu0 %vm2267_vm0, %v1695_v60 }
  0x71   :  { %1191 = vmatprep.mubr.msk.f32.mxu0 %vm2267_vm0, %v1704_v61 }
  0x74   :  { %1192 = vmatmul.mubr.msk.f32.gmra.mrb[24].mxu0 %vm2267_vm0, %v1704_v61 }
  0x75   :  { %1193 = vmatprep.mubr.msk.f32.mxu0 %vm2267_vm0, %v1713_v62 }
  0x78   :  { %1194 = vmatmul.mubr.msk.f32.gmra.mrb[26].mxu0 %vm2267_vm0, %v1713_v62 }
  0x79   :  { %1195 = vmatprep.mubr.msk.f32.mxu0 %vm2267_vm0, %v1722_v63 }
  0x7c   :  { %1196 = vmatmul.mubr.msk.f32.gmra.mrb[28].mxu0 %vm2267_vm0, %v1722_v63 }
  0x7d   :  { %1197 = vmatprep.mubr.msk.f32.mxu0 %vm2267_vm0, %v1731_v0 }
  0x80   :  { %1198 = vmatmul.mubr.msk.f32.gmra.mrb[30].mxu0 %vm2267_vm0, %v1731_v0 }
 0x117   :  { %v279_v8 = vpop.f32.mrb[0].mxu0 }
 0x118   :  { %v1752_v9 = vsub.f32 %v1747_v6, %v279_v8  ;;  %v281_v10 = vpop.f32.mrb[1].mxu0 }
 0x119   :  { %v1755_v11 = vsub.f32 %v1749_v7, %v281_v10 }
 0x11b   :  { %v285_v12 = vpop.f32.mrb[2].mxu0  ;;  %vm420_vm2 = vcmp.le.f32.partialorder %v1752_v9, %v1755_v11 }
 0x11c   :  { %v1760_v13 = vsub.f32 %v1747_v6, %v285_v12  ;;  %v287_v14 = vpop.f32.mrb[3].mxu0  ;;  %v421_v15 = vsel %vm420_vm2, %v1752_v9, %v1755_v11 }
 0x11d   :  { %v1768_v16 = vsub.f32 %v1749_v7, %v287_v14  ;;  %423 = vmin.index.xlane.f32.xlu0 %v421_v15 }
 0x11f   :  { %vm428_vm3 = vcmp.le.f32.partialorder %v1760_v13, %v1768_v16  ;;  %v291_v17 = vpop.f32.mrb[4].mxu0 }
 0x120   :  { %v429_v18 = vsel %vm428_vm3, %v1760_v13, %v1768_v16  ;;  %v1778_v19 = vsub.f32 %v1747_v6, %v291_v17  ;;  %v293_v20 = vpop.f32.mrb[5].mxu0 }
 0x121   :  { %431 = vmin.index.xlane.f32.xlu1 %v429_v18  ;;  %v1781_v22 = vsub.f32 %v1749_v7, %v293_v20 }
 0x123   :  { %vm436_vm4 = vcmp.le.f32.partialorder %v1778_v19, %v1781_v22  ;;  %v297_v23 = vpop.f32.mrb[6].mxu0 }
 0x124   :  { %v1786_v24 = vsub.f32 %v1747_v6, %v297_v23  ;;  %v299_v25 = vpop.f32.mrb[7].mxu0  ;;  %v437_v26 = vsel %vm436_vm4, %v1778_v19, %v1781_v22 }
 0x125   :  { %v1794_v27 = vsub.f32 %v1749_v7, %v299_v25  ;;  %439 = vmin.index.xlane.f32.xlu1 %v437_v26 }
 0x127   :  { %vm444_vm5 = vcmp.le.f32.partialorder %v1786_v24, %v1794_v27  ;;  %v303_v28 = vpop.f32.mrb[8].mxu0 }
 0x128   :  { %v1799_v29 = vsub.f32 %v1747_v6, %v303_v28  ;;  %v305_v30 = vpop.f32.mrb[9].mxu0  ;;  %v445_v31 = vsel %vm444_vm5, %v1786_v24, %v1794_v27 }
 0x129   :  { %v1807_v32 = vsub.f32 %v1749_v7, %v305_v30  ;;  %447 = vmin.index.xlane.f32.xlu0 %v445_v31 }
 0x12b   :  { %vm452_vm6 = vcmp.le.f32.partialorder %v1799_v29, %v1807_v32  ;;  %v309_v33 = vpop.f32.mrb[10].mxu0 }
 0x12c   :  { %v1812_v34 = vsub.f32 %v1747_v6, %v309_v33  ;;  %v311_v35 = vpop.f32.mrb[11].mxu0  ;;  %v453_v36 = vsel %vm452_vm6, %v1799_v29, %v1807_v32 }
 0x12d   :  { %v1820_v37 = vsub.f32 %v1749_v7, %v311_v35  ;;  %455 = vmin.index.xlane.f32.xlu1 %v453_v36 }
 0x12f   :  { %vm460_vm7 = vcmp.le.f32.partialorder %v1812_v34, %v1820_v37  ;;  %v315_v38 = vpop.f32.mrb[12].mxu0 }
 0x130   :  { %v1825_v39 = vsub.f32 %v1747_v6, %v315_v38  ;;  %v317_v40 = vpop.f32.mrb[13].mxu0  ;;  %v461_v41 = vsel %vm460_vm7, %v1812_v34, %v1820_v37 }
 0x131   :  { %v1833_v42 = vsub.f32 %v1749_v7, %v317_v40  ;;  %463 = vmin.index.xlane.f32.xlu1 %v461_v41 }
 0x133   :  { %vm468_vm8 = vcmp.le.f32.partialorder %v1825_v39, %v1833_v42  ;;  %v321_v43 = vpop.f32.mrb[14].mxu0 }
 0x134   :  { %v1838_v44 = vsub.f32 %v1747_v6, %v321_v43  ;;  %v323_v45 = vpop.f32.mrb[15].mxu0  ;;  %v469_v46 = vsel %vm468_vm8, %v1825_v39, %v1833_v42 }
 0x135   :  { %v1846_v47 = vsub.f32 %v1749_v7, %v323_v45  ;;  %471 = vmin.index.xlane.f32.xlu1 %v469_v46 }
 0x137   :  { %vm476_vm9 = vcmp.le.f32.partialorder %v1838_v44, %v1846_v47  ;;  %v327_v48 = vpop.f32.mrb[16].mxu0 }
 0x138   :  { %v1851_v49 = vsub.f32 %v1747_v6, %v327_v48  ;;  %v329_v3 = vpop.f32.mrb[17].mxu0  ;;  %v477_v4 = vsel %vm476_vm9, %v1838_v44, %v1846_v47 }
 0x139   :  { %v1859_v5 = vsub.f32 %v1749_v7, %v329_v3  ;;  %479 = vmin.index.xlane.f32.xlu1 %v477_v4 }
 0x13b   :  { %vm484_vm10 = vcmp.le.f32.partialorder %v1851_v49, %v1859_v5  ;;  %v333_v8 = vpop.f32.mrb[18].mxu0 }
 0x13c   :  { %v1864_v10 = vsub.f32 %v1747_v6, %v333_v8  ;;  %v335_v12 = vpop.f32.mrb[19].mxu0  ;;  %v485_v14 = vsel %vm484_vm10, %v1851_v49, %v1859_v5 }
 0x13d   :  { %v1872_v15 = vsub.f32 %v1749_v7, %v335_v12  ;;  %487 = vmin.index.xlane.f32.xlu1 %v485_v14 }
 0x13f   :  { %vm492_vm11 = vcmp.le.f32.partialorder %v1864_v10, %v1872_v15  ;;  %v339_v17 = vpop.f32.mrb[20].mxu0 }
 0x140   :  { %v1877_v18 = vsub.f32 %v1747_v6, %v339_v17  ;;  %v341_v20 = vpop.f32.mrb[21].mxu0  ;;  %v493_v23 = vsel %vm492_vm11, %v1864_v10, %v1872_v15 }
 0x141   :  { %v1885_v25 = vsub.f32 %v1749_v7, %v341_v20  ;;  %495 = vmin.index.xlane.f32.xlu1 %v493_v23 }
 0x143   :  { %vm500_vm12 = vcmp.le.f32.partialorder %v1877_v18, %v1885_v25  ;;  %v345_v26 = vpop.f32.mrb[22].mxu0 }
 0x144   :  { %v1890_v28 = vsub.f32 %v1747_v6, %v345_v26  ;;  %v347_v30 = vpop.f32.mrb[23].mxu0  ;;  %v501_v31 = vsel %vm500_vm12, %v1877_v18, %v1885_v25 }
 0x145   :  { %v1898_v33 = vsub.f32 %v1749_v7, %v347_v30  ;;  %503 = vmin.index.xlane.f32.xlu0 %v501_v31 }
 0x147   :  { %vm508_vm13 = vcmp.le.f32.partialorder %v1890_v28, %v1898_v33  ;;  %v351_v35 = vpop.f32.mrb[24].mxu0 }
 0x148   :  { %v1903_v36 = vsub.f32 %v1747_v6, %v351_v35  ;;  %v353_v38 = vpop.f32.mrb[25].mxu0  ;;  %v509_v40 = vsel %vm508_vm13, %v1890_v28, %v1898_v33 }
 0x149   :  { %v1911_v41 = vsub.f32 %v1749_v7, %v353_v38  ;;  %511 = vmin.index.xlane.f32.xlu0 %v509_v40  ;;  %v1960_v38 = vand.u32 127, %v375_v1 }
 0x14b   :  { %vm516_vm14 = vcmp.le.f32.partialorder %v1903_v36, %v1911_v41  ;;  %v357_v43 = vpop.f32.mrb[26].mxu0  ;;  %v809_v18 = vadd.s32 4294967288, %v1960_v38  ;;  %v807_v28 = vsub.s32 %v1960_v38, %v1740_v2 }
 0x14c   :  { %v517_v45 = vsel %vm516_vm14, %v1903_v36, %v1911_v41  ;;  %v1921_v46 = vsub.f32 %v1747_v6, %v357_v43  ;;  %v359_v48 = vpop.f32.mrb[27].mxu0  ;;  %v1428_v36 = vmov 1.0  }
 0x14d   :  { %519 = vmin.index.xlane.f32.xlu0 %v517_v45  ;;  %v1924_v3 = vsub.f32 %v1749_v7, %v359_v48  ;;  %v812_v33 = vsub.s32 %v809_v18, %v1740_v2 }
 0x14f   :  { %vm524_vm15 = vcmp.le.f32.partialorder %v1921_v46, %v1924_v3  ;;  %v363_v4 = vpop.f32.mrb[28].mxu0 }
 0x150   :  { %v525_v8 = vsel %vm524_vm15, %v1921_v46, %v1924_v3  ;;  %v1934_v12 = vsub.f32 %v1747_v6, %v363_v4  ;;  %v365_v14 = vpop.f32.mrb[29].mxu0  ;;  %v816_v46 = vadd.s32 4294967280, %v1960_v38  ;;  %v823_v3 = vadd.s32 4294967272, %v1960_v38 }
 0x151   :  { %527 = vmin.index.xlane.f32.xlu0 %v525_v8  ;;  %v1937_v17 = vsub.f32 %v1749_v7, %v365_v14 }
 0x153   :  { %vm532_vm1 = vcmp.le.f32.partialorder %v1934_v12, %v1937_v17  ;;  %v369_v23 = vpop.f32.mrb[30].mxu0 }
 0x154   :  { %v533_v20 = vsel %vm532_vm1, %v1934_v12, %v1937_v17  ;;  %v1947_v26 = vsub.f32 %v1747_v6, %v369_v23  ;;  %v371_v30 = vpop.f32.mrb[31].mxu0  ;;  %v1963_v6 = vadd.s32 128, %v1960_v38 }
 0x155   :  { %535 = vmin.index.xlane.f32.xlu0 %v533_v20  ;;  %v1950_v31 = vsub.f32 %v1749_v7, %v371_v30  ;;  %v819_v30 = vsub.s32 %v816_v46, %v1740_v2 }
 0x156   :  { %v422_v7 = vsel %vm420_vm2, %v1960_v38, %v1963_v6  ;;  %v430_v1 = vsel %vm428_vm3, %v1960_v38, %v1963_v6  ;;  %v438_v9 = vsel %vm436_vm4, %v1960_v38, %v1963_v6  ;;  %v446_v11 = vsel %vm444_vm5, %v1960_v38, %v1963_v6 }
 0x157   :  { %vm540_vm0 = vcmp.le.f32.partialorder %v1947_v26, %v1950_v31  ;;  %v462_v8 = vsel %vm460_vm7, %v1960_v38, %v1963_v6  ;;  %v470_v24 = vsel %vm468_vm8, %v1960_v38, %v1963_v6  ;;  %v494_v34 = vsel %vm492_vm11, %v1960_v38, %v1963_v6 }
 0x158   :  { %v541_v35 = vsel %vm540_vm0, %v1947_v26, %v1950_v31  ;;  %v518_v39 = vsel %vm516_vm14, %v1960_v38, %v1963_v6  ;;  %v454_v42 = vsel %vm452_vm6, %v1960_v38, %v1963_v6  ;;  %v478_v10 = vsel %vm476_vm9, %v1960_v38, %v1963_v6 }
 0x159   :  { %v486_v15 = vsel %vm484_vm10, %v1960_v38, %v1963_v6  ;;  %v502_v29 = vsel %vm500_vm12, %v1960_v38, %v1963_v6  ;;  %v510_v32 = vsel %vm508_vm13, %v1960_v38, %v1963_v6  ;;  %v526_v47 = vsel %vm524_vm15, %v1960_v38, %v1963_v6 }
 0x15a   :  { %v534_v5 = vsel %vm532_vm1, %v1960_v38, %v1963_v6  ;;  %vm814_vm4 = vcmask 130112   ;;  %vm821_vm7 = vcmask 195712   ;;  %vm828_vm8 = vcmask 261312  }
 0x15b   :  { %vm835_vm13 = vcmask 326912   ;;  %vm842_vm14 = vcmask 392512  }
 0x1aa   :  { %v424_v40 = vpop.xlane.xlu0 %423 }
 0x1ab   :  { %1364 = vset.pattern.permute.xlu0 %v424_v40 }
 0x1ae   :  { %v432_v43 = vpop.xlane.xlu1 %431 }
 0x1af   :  { %1365 = vset.pattern.permute.xlu1 %v432_v43  ;;  %426 = vperm.xlu0 %1364, %v422_v7  }
 0x1b2   :  { %v440_v45 = vpop.xlane.xlu1 %439 }
 0x1b3   :  { %434 = vperm.xlu1 %1365, %v430_v1  }
 0x1b6   :  { %v448_v48 = vpop.xlane.xlu0 %447 }
 0x1b7   :  { %1366 = vset.pattern.permute.xlu1 %v440_v45  ;;  %1367 = vset.pattern.permute.xlu0 %v448_v48 }
 0x1ba   :  { %v456_v4 = vpop.xlane.xlu1 %455 }
 0x1bb   :  { %442 = vperm.xlu1 %1366, %v438_v9   ;;  %450 = vperm.xlu0 %1367, %v446_v11   ;;  %v837_v9 = vadd.s32 4294967256, %v1960_v38  ;;  %v844_v11 = vadd.s32 4294967248, %v1960_v38 }
 0x1be   :  { %v464_v13 = vpop.xlane.xlu1 %463 }
 0x1bf   :  { %1369 = vset.pattern.permute.xlu0 %v464_v13  ;;  %1368 = vset.pattern.permute.xlu1 %v456_v4  ;;  %v830_v4 = vadd.s32 4294967264, %v1960_v38 }
 0x1c2   :  { %v472_v16 = vpop.xlane.xlu1 %471 }
 0x1c3   :  { %466 = vperm.xlu0 %1369, %v462_v8   ;;  %v833_v8 = vsub.s32 %v830_v4, %v1740_v2 }
 0x1c6   :  { %v480_v19 = vpop.xlane.xlu1 %479 }
 0x1c7   :  { %1370 = vset.pattern.permute.xlu0 %v472_v16 }
 0x1ca   :  { %v488_v22 = vpop.xlane.xlu1 %487 }
 0x1cb   :  { %474 = vperm.xlu0 %1370, %v470_v24  }
 0x1ce   :  { %v496_v27 = vpop.xlane.xlu1 %495 }
 0x1cf   :  { %1373 = vset.pattern.permute.xlu0 %v496_v27 }
 0x1d2   :  { %v504_v14 = vpop.xlane.xlu0 %503 }
 0x1d3   :  { %498 = vperm.xlu0 %1373, %v494_v34   ;;  %v851_v34 = vadd.s32 4294967240, %v1960_v38 }
 0x1d5   :  { %v854_v31 = vsub.s32 %v851_v34, %v1740_v2 }
 0x1d6   :  { %v512_v37 = vpop.xlane.xlu0 %511 }
 0x1da   :  { %v520_v20 = vpop.xlane.xlu0 %519 }
 0x1db   :  { %1376 = vset.pattern.permute.xlu0 %v520_v20 }
 0x1de   :  { %v528_v44 = vpop.xlane.xlu0 %527 }
 0x1df   :  { %522 = vperm.xlu0 %1376, %v518_v39   ;;  %543 = vmin.index.xlane.f32.xlu1 %v541_v35  ;;  %v826_v35 = vsub.s32 %v823_v3, %v1740_v2 }
 0x1e2   :  { %v536_v49 = vpop.xlane.xlu0 %535 }
 0x1f0   :  { %458 = vperm.xlu1 %1368, %v454_v42  }
 0x1f4   :  { %1371 = vset.pattern.permute.xlu1 %v480_v19  ;;  %v840_v19 = vsub.s32 %v837_v9, %v1740_v2 }
 0x1f8   :  { %482 = vperm.xlu1 %1371, %v478_v10  }
 0x1fc   :  { %1372 = vset.pattern.permute.xlu1 %v488_v22  ;;  %v847_v22 = vsub.s32 %v844_v11, %v1740_v2 }
 0x200   :  { %490 = vperm.xlu1 %1372, %v486_v15  }
 0x204   :  { %1374 = vset.pattern.permute.xlu1 %v504_v14  ;;  %v542_v14 = vsel %vm540_vm0, %v1960_v38, %v1963_v6 }
 0x208   :  { %506 = vperm.xlu1 %1374, %v502_v29  }
 0x20c   :  { %1375 = vset.pattern.permute.xlu1 %v512_v37 }
 0x210   :  { %514 = vperm.xlu1 %1375, %v510_v32   ;;  %v858_v32 = vadd.s32 4294967232, %v1960_v38 }
 0x214   :  { %1377 = vset.pattern.permute.xlu1 %v528_v44  ;;  %v865_v44 = vadd.s32 4294967224, %v1960_v38 }
 0x218   :  { %530 = vperm.xlu1 %1377, %v526_v47  }
 0x21c   :  { %1378 = vset.pattern.permute.xlu1 %v536_v49  ;;  %v861_v49 = vsub.s32 %v858_v32, %v1740_v2 }
 0x220   :  { %538 = vperm.xlu1 %1378, %v534_v5   ;;  %v868_v5 = vsub.s32 %v865_v44, %v1740_v2 }
 0x22e   :  { %v427_v25 = vpop.permute.xlu0 %426 }
 0x22f   :  { %vm549_vm2 = vcmp.eq.s32.totalorder %v427_v25, %v1963_v6  ;;  %vm548_vm3 = vcmp.eq.s32.totalorder %v427_v25, %v1960_v38  ;;  %v808_v12 = vrot.slane %v427_v25, %v807_v28 }
 0x230   :  { %1103 = vmatprep.mubr.msk.f32.mxu1 %vm549_vm2, %v1428_v36  ;;  %vm849_vm2 = vcmask 458112  }
 0x231   :  { %1104 = vmatmul.mubr.msk.f32.vlgmr.msra.gmra.mrb[0].mxu1 %vm548_vm3, %v1428_v36 }
 0x232   :  { %v435_v41 = vpop.permute.xlu1 %434 }
 0x233   :  { %v813_v17 = vrot.slane %v435_v41, %v812_v33  ;;  %vm551_vm5 = vcmp.eq.s32.totalorder %v435_v41, %v1963_v6  ;;  %vm550_vm6 = vcmp.eq.s32.totalorder %v435_v41, %v1960_v38  ;;  %v872_v33 = vadd.s32 4294967216, %v1960_v38 }
 0x234   :  { %1105 = vmatprep.mubr.msk.f32.mxu1 %vm551_vm5, %v1428_v36 }
 0x235   :  { %v815_v23 = vsel %vm814_vm4, %v813_v17, %v808_v12  ;;  %1106 = vmatmul.mubr.msk.f32.gmra.mrb[2].mxu1 %vm550_vm6, %v1428_v36  ;;  %vm856_vm4 = vcmask 523712   ;;  %v875_v12 = vsub.s32 %v872_v33, %v1740_v2 }
 0x23a   :  { %v443_v40 = vpop.permute.xlu1 %442  ;;  %v451_v43 = vpop.permute.xlu0 %450 }
 0x23b   :  { %v820_v7 = vrot.slane %v443_v40, %v819_v30  ;;  %v827_v1 = vrot.slane %v451_v43, %v826_v35  ;;  %vm553_vm9 = vcmp.eq.s32.totalorder %v443_v40, %v1963_v6  ;;  %vm552_vm10 = vcmp.eq.s32.totalorder %v443_v40, %v1960_v38 }
 0x23c   :  { %1107 = vmatprep.mubr.msk.f32.mxu1 %vm553_vm9, %v1428_v36  ;;  %vm555_vm11 = vcmp.eq.s32.totalorder %v451_v43, %v1963_v6  ;;  %vm554_vm12 = vcmp.eq.s32.totalorder %v451_v43, %v1960_v38  ;;  %vm863_vm9 = vcmask 589312   ;;  %v879_v30 = vadd.s32 4294967208, %v1960_v38 }
 0x23d   :  { %v822_v45 = vsel %vm821_vm7, %v820_v7, %v815_v23  ;;  %1108 = vmatmul.mubr.msk.f32.gmra.mrb[4].mxu1 %vm552_vm10, %v1428_v36  ;;  %v886_v43 = vadd.s32 4294967200, %v1960_v38 }
 0x23e   :  { %v829_v48 = vsel %vm828_vm8, %v827_v1, %v822_v45  ;;  %1109 = vmatprep.mubr.msk.f32.mxu1 %vm555_vm11, %v1428_v36  ;;  %vm870_vm11 = vcmask 654912   ;;  %v882_v40 = vsub.s32 %v879_v30, %v1740_v2 }
 0x23f   :  { %v889_v9 = vsub.s32 %v886_v43, %v1740_v2 }
 0x241   :  { %1110 = vmatmul.mubr.msk.f32.gmra.mrb[6].mxu1 %vm554_vm12, %v1428_v36 }
 0x242   :  { %v467_v13 = vpop.permute.xlu0 %466 }
 0x243   :  { %v841_v20 = vrot.slane %v467_v13, %v840_v19  ;;  %vm559_vm3 = vcmp.eq.s32.totalorder %v467_v13, %v1963_v6  ;;  %vm558_vm0 = vcmp.eq.s32.totalorder %v467_v13, %v1960_v38 }
 0x24a   :  { %v475_v24 = vpop.permute.xlu0 %474 }
 0x24b   :  { %v848_v39 = vrot.slane %v475_v24, %v847_v22  ;;  %vm561_vm5 = vcmp.eq.s32.totalorder %v475_v24, %v1963_v6  ;;  %vm560_vm6 = vcmp.eq.s32.totalorder %v475_v24, %v1960_v38 }
 0x252   :  { %v499_v18 = vpop.permute.xlu0 %498 }
 0x253   :  { %v869_v41 = vrot.slane %v499_v18, %v868_v5 }
 0x25e   :  { %v523_v7 = vpop.permute.xlu0 %522 }
 0x25f   :  { %v890_v13 = vrot.slane %v523_v7, %v889_v9 }
 0x26c   :  { %v544_v16 = vpop.xlane.xlu1 %543 }
 0x26d   :  { %1379 = vset.pattern.permute.xlu0 %v544_v16 }
 0x270   :  { %v459_v27 = vpop.permute.xlu1 %458 }
 0x271   :  { %v834_v37 = vrot.slane %v459_v27, %v833_v8  ;;  %546 = vperm.xlu0 %1379, %v542_v14   ;;  %vm557_vm15 = vcmp.eq.s32.totalorder %v459_v27, %v1963_v6  ;;  %vm556_vm1 = vcmp.eq.s32.totalorder %v459_v27, %v1960_v38  ;;  %v900_v27 = vadd.s32 4294967184, %v1960_v38 }
 0x272   :  { %1111 = vmatprep.mubr.msk.f32.mxu1 %vm557_vm15, %v1428_v36  ;;  %vm877_vm15 = vcmask 720512   ;;  %v907_v14 = vadd.s32 4294967176, %v1960_v38 }
 0x273   :  { %v836_v42 = vsel %vm835_vm13, %v834_v37, %v829_v48  ;;  %1112 = vmatmul.mubr.msk.f32.gmra.mrb[8].mxu1 %vm556_vm1, %v1428_v36  ;;  %vm567_vm13 = vcmp.eq.s32.totalorder %v499_v18, %v1963_v6  ;;  %v893_v48 = vadd.s32 4294967192, %v1960_v38  ;;  %v903_v34 = vsub.s32 %v900_v27, %v1740_v2 }
 0x274   :  { %v843_v26 = vsel %vm842_vm14, %v841_v20, %v836_v42  ;;  %1113 = vmatprep.mubr.msk.f32.mxu1 %vm559_vm3, %v1428_v36  ;;  %vm566_vm14 = vcmp.eq.s32.totalorder %v499_v18, %v1960_v38  ;;  %vm884_vm3 = vcmask 786112   ;;  %v910_v37 = vsub.s32 %v907_v14, %v1740_v2 }
 0x275   :  { %v850_v10 = vsel %vm849_vm2, %v848_v39, %v843_v26  ;;  %v896_v11 = vsub.s32 %v893_v48, %v1740_v2 }
 0x277   :  { %1114 = vmatmul.mubr.msk.f32.gmra.mrb[10].mxu1 %vm558_vm0, %v1428_v36  ;;  %v483_v15 = vpop.permute.xlu1 %482 }
 0x278   :  { %v855_v29 = vrot.slane %v483_v15, %v854_v31  ;;  %1115 = vmatprep.mubr.msk.f32.mxu1 %vm561_vm5, %v1428_v36  ;;  %vm563_vm7 = vcmp.eq.s32.totalorder %v483_v15, %v1963_v6  ;;  %vm562_vm8 = vcmp.eq.s32.totalorder %v483_v15, %v1960_v38  ;;  %vm573_vm5 = vcmp.eq.s32.totalorder %v523_v7, %v1963_v6 }
 0x27a   :  { %v857_v47 = vsel %vm856_vm4, %v855_v29, %v850_v10 }
 0x27b   :  { %1116 = vmatmul.mubr.msk.f32.gmra.mrb[12].mxu1 %vm560_vm6, %v1428_v36  ;;  %vm572_vm6 = vcmp.eq.s32.totalorder %v523_v7, %v1960_v38 }
 0x27c   :  { %1117 = vmatprep.mubr.msk.f32.mxu1 %vm563_vm7, %v1428_v36  ;;  %vm891_vm7 = vcmask 851712  }
 0x27f   :  { %1118 = vmatmul.mubr.msk.f32.gmra.mrb[14].mxu1 %vm562_vm8, %v1428_v36  ;;  %v491_v25 = vpop.permute.xlu1 %490  ;;  %vm898_vm8 = vcmask 917312  }
 0x280   :  { %v862_v28 = vrot.slane %v491_v25, %v861_v49  ;;  %vm565_vm10 = vcmp.eq.s32.totalorder %v491_v25, %v1963_v6  ;;  %vm564_vm12 = vcmp.eq.s32.totalorder %v491_v25, %v1960_v38 }
 0x281   :  { %1119 = vmatprep.mubr.msk.f32.mxu1 %vm565_vm10, %v1428_v36 }
 0x282   :  { %v864_v46 = vsel %vm863_vm9, %v862_v28, %v857_v47 }
 0x283   :  { %1120 = vmatmul.mubr.msk.f32.gmra.mrb[16].mxu1 %vm564_vm12, %v1428_v36  ;;  %v871_v3 = vsel %vm870_vm11, %v869_v41, %v864_v46 }
 0x284   :  { %1121 = vmatprep.mubr.msk.f32.mxu1 %vm567_vm13, %v1428_v36  ;;  %vm905_vm13 = vcmask 982912  }
 0x287   :  { %1122 = vmatmul.mubr.msk.f32.gmra.mrb[18].mxu1 %vm566_vm14, %v1428_v36  ;;  %v507_v17 = vpop.permute.xlu1 %506  ;;  %vm912_vm14 = vcmask 1048512  }
 0x288   :  { %v876_v23 = vrot.slane %v507_v17, %v875_v12  ;;  %vm569_vm1 = vcmp.eq.s32.totalorder %v507_v17, %v1963_v6  ;;  %vm568_vm2 = vcmp.eq.s32.totalorder %v507_v17, %v1960_v38 }
 0x289   :  { %1123 = vmatprep.mubr.msk.f32.mxu1 %vm569_vm1, %v1428_v36 }
 0x28a   :  { %v878_v35 = vsel %vm877_vm15, %v876_v23, %v871_v3 }
 0x28b   :  { %1124 = vmatmul.mubr.msk.f32.gmra.mrb[20].mxu1 %vm568_vm2, %v1428_v36  ;;  %vm2270_vm2 = vcmask 261120  }
 0x28f   :  { %v515_v1 = vpop.permute.xlu1 %514 }
 0x290   :  { %v883_v45 = vrot.slane %v515_v1, %v882_v40  ;;  %vm571_vm0 = vcmp.eq.s32.totalorder %v515_v1, %v1963_v6  ;;  %vm570_vm4 = vcmp.eq.s32.totalorder %v515_v1, %v1960_v38 }
 0x291   :  { %1125 = vmatprep.mubr.msk.f32.mxu1 %vm571_vm0, %v1428_v36  ;;  %vm2272_vm0 = vmmov %vm2270_vm2 }
 0x292   :  { %v885_v4 = vsel %vm884_vm3, %v883_v45, %v878_v35  ;;  %1126 = vmatmul.mubr.msk.f32.gmra.mrb[22].mxu1 %vm570_vm4, %v1428_v36  ;;  %vm2271_vm3 = vmmov %vm2270_vm2 }
 0x293   :  { %1127 = vmatprep.mubr.msk.f32.mxu1 %vm573_vm5, %v1428_v36  ;;  %v892_v19 = vsel %vm891_vm7, %v890_v13, %v885_v4  ;;  %vm2273_vm4 = vmmov %vm2272_vm0 }
 0x294   :  { %vm2274_vm5 = vmmov %vm2272_vm0 }
 0x295   :  { %vm2276_vm7 = vmmov %vm2272_vm0 }
 0x296   :  { %1128 = vmatmul.mubr.msk.f32.gmra.mrb[24].mxu1 %vm572_vm6, %v1428_v36  ;;  %vm2275_vm6 = vmmov %vm2272_vm0 }
 0x297   :  { %v531_v16 = vpop.permute.xlu1 %530 }
 0x298   :  { %v897_v8 = vrot.slane %v531_v16, %v896_v11  ;;  %vm575_vm9 = vcmp.eq.s32.totalorder %v531_v16, %v1963_v6  ;;  %vm574_vm10 = vcmp.eq.s32.totalorder %v531_v16, %v1960_v38 }
 0x299   :  { %1129 = vmatprep.mubr.msk.f32.mxu1 %vm575_vm9, %v1428_v36  ;;  %vm2278_vm9 = vmmov %vm2272_vm0 }
 0x29a   :  { %1130 = vmatmul.mubr.msk.f32.gmra.mrb[26].mxu1 %vm574_vm10, %v1428_v36  ;;  %v899_v22 = vsel %vm898_vm8, %v897_v8, %v892_v19  ;;  %vm2277_vm8 = vmmov %vm2272_vm0 }
 0x29b   :  { %vm2279_vm10 = vmmov %vm2272_vm0 }
 0x29f   :  { %v539_v24 = vpop.permute.xlu1 %538 }
 0x2a0   :  { %vm577_vm11 = vcmp.eq.s32.totalorder %v539_v24, %v1963_v6  ;;  %vm576_vm12 = vcmp.eq.s32.totalorder %v539_v24, %v1960_v38  ;;  %v904_v20 = vrot.slane %v539_v24, %v903_v34 }
 0x2a1   :  { %1131 = vmatprep.mubr.msk.f32.mxu1 %vm577_vm11, %v1428_v36  ;;  %vm2280_vm11 = vmmov %vm2272_vm0 }
 0x2a2   :  { %1132 = vmatmul.mubr.msk.f32.gmra.mrb[28].mxu1 %vm576_vm12, %v1428_v36  ;;  %v906_v26 = vsel %vm905_vm13, %v904_v20, %v899_v22  ;;  %vm2281_vm12 = vmmov %vm2272_vm0 }
 0x2a3   :  { %vm2282_vm13 = vmmov %vm2272_vm0 }
 0x2f0   :  { %v547_v39 = vpop.permute.xlu0 %546 }
 0x2f1   :  { %vm578_vm15 = vcmp.eq.s32.totalorder %v547_v39, %v1960_v38  ;;  %vm579_vm1 = vcmp.eq.s32.totalorder %v547_v39, %v1963_v6  ;;  %v911_v42 = vrot.slane %v547_v39, %v910_v37 }
 0x2f2   :  { %1133 = vmatprep.mubr.msk.f32.mxu1 %vm579_vm1, %v1428_v36  ;;  %vm2285_vm1 = vmmov %vm2272_vm0 }
 0x2f3   :  { %1134 = vmatmul.mubr.msk.f32.gmra.mrb[30].mxu1 %vm578_vm15, %v1428_v36  ;;  %v913_v31 = vsel %vm912_vm14, %v911_v42, %v906_v26  ;;  %vm2283_vm14 = vmmov %vm2272_vm0 }
 0x2f4   :  { %914 = vst [vmem:[#allocation2] sm:$0x1] %v913_v31  ;;  %vm2284_vm15 = vmmov %vm2272_vm0 }
 0x304   :  { %v1231_v10 = vpop.f32.mrb[0].mxu1 }
 0x305   :  { %v1232_v15 = vpop.f32.mrb[1].mxu1 }
 0x306   :  { %v1233_v29 = vadd.f32 %v1232_v15, %v1231_v10 }
 0x308   :  { %789 = vst.msk [vmem:[%s2264_s3] sm:$0xff] %vm2270_vm2, %v1233_v29  ;;  %v915_v2 = vsub.f32 %v1233_v29, %v1518_v21  ;;  %v1234_v38 = vpop.f32.mrb[2].mxu1  ;;  %vm2286_vm2 = vmmov %vm2272_vm0 }
 0x309   :  { %v1235_v6 = vpop.f32.mrb[3].mxu1 }
 0x30a   :  { %v1236_v32 = vadd.f32 %v1235_v6, %v1234_v38  ;;  %v931_v44 = vmul.f32 %v915_v2, %v915_v2 }
 0x30c   :  { %790 = vst.msk [vmem:[%s2264_s3 + $0x8] sm:$0xff] %vm2271_vm3, %v1236_v32  ;;  %v916_v36 = vsub.f32 %v1236_v32, %v1605_v50  ;;  %v947_v49 = vsel %vm2272_vm0, %v931_v44, 0.0  ;;  %vm2287_vm3 = vmmov %vm2272_vm0 }
 0x30e   :  { %v932_v47 = vmul.f32 %v916_v36, %v916_v36 }
 0x310   :  { %v948_v5 = vsel %vm2273_vm4, %v932_v47, 0.0  ;;  %v1237_v18 = vpop.f32.mrb[4].mxu1  ;;  %vm2288_vm4 = vmmov %vm2272_vm0 }
 0x311   :  { %v949_v25 = vadd.f32 %v948_v5, %v947_v49  ;;  %v1238_v28 = vpop.f32.mrb[5].mxu1 }
 0x312   :  { %v1239_v21 = vadd.f32 %v1238_v28, %v1237_v18 }
 0x314   :  { %791 = vst.msk [vmem:[%s2264_s3 + $0x10] sm:$0xff] %vm2274_vm5, %v1239_v21  ;;  %v917_v33 = vsub.f32 %v1239_v21, %v1614_v51  ;;  %v1240_v41 = vpop.f32.mrb[6].mxu1  ;;  %vm2289_vm5 = vmmov %vm2272_vm0 }
 0x315   :  { %v1241_v46 = vpop.f32.mrb[7].mxu1 }
 0x316   :  { %v933_v3 = vmul.f32 %v917_v33, %v917_v33  ;;  %v1242_v50 = vadd.f32 %v1241_v46, %v1240_v41 }
 0x318   :  { %v950_v12 = vsel %vm2275_vm6, %v933_v3, 0.0  ;;  %792 = vst.msk [vmem:[%s2264_s3 + $0x18] sm:$0xff] %vm2276_vm7, %v1242_v50  ;;  %v918_v17 = vsub.f32 %v1242_v50, %v1623_v52  ;;  %vm2290_vm6 = vmmov %vm2272_vm0 }
 0x319   :  { %v951_v23 = vadd.f32 %v950_v12, %v949_v25  ;;  %vm2291_vm7 = vmmov %vm2272_vm0 }
 0x31a   :  { %v934_v30 = vmul.f32 %v918_v17, %v918_v17 }
 0x31c   :  { %v952_v35 = vsel %vm2277_vm8, %v934_v30, 0.0  ;;  %vm2292_vm8 = vmmov %vm2272_vm0 }
 0x31d   :  { %v953_v40 = vadd.f32 %v952_v35, %v951_v23 }
 0x346   :  { %v1243_v43 = vpop.f32.mrb[8].mxu1 }
 0x347   :  { %v1244_v51 = vpop.f32.mrb[9].mxu1 }
 0x348   :  { %v1245_v7 = vadd.f32 %v1244_v51, %v1243_v43 }
 0x34a   :  { %793 = vst.msk [vmem:[%s2264_s3 + $0x20] sm:$0xff] %vm2278_vm9, %v1245_v7  ;;  %v919_v1 = vsub.f32 %v1245_v7, %v1632_v53  ;;  %v1246_v45 = vpop.f32.mrb[10].mxu1  ;;  %vm2293_vm9 = vmmov %vm2272_vm0 }
 0x34b   :  { %v1247_v48 = vpop.f32.mrb[11].mxu1 }
 0x34c   :  { %v935_v4 = vmul.f32 %v919_v1, %v919_v1  ;;  %v1248_v9 = vadd.f32 %v1247_v48, %v1246_v45 }
 0x34e   :  { %v954_v52 = vsel %vm2279_vm10, %v935_v4, 0.0  ;;  %794 = vst.msk [vmem:[%s2264_s3 + $0x28] sm:$0xff] %vm2280_vm11, %v1248_v9  ;;  %v920_v11 = vsub.f32 %v1248_v9, %v1641_v54  ;;  %v1249_v13 = vpop.f32.mrb[12].mxu1  ;;  %vm2294_vm10 = vmmov %vm2272_vm0 }
 0x34f   :  { %v955_v16 = vadd.f32 %v954_v52, %v953_v40  ;;  %v1250_v8 = vpop.f32.mrb[13].mxu1  ;;  %vm2295_vm11 = vmmov %vm2272_vm0 }
 0x350   :  { %v936_v19 = vmul.f32 %v920_v11, %v920_v11  ;;  %v1251_v22 = vadd.f32 %v1250_v8, %v1249_v13 }
 0x352   :  { %v956_v53 = vsel %vm2281_vm12, %v936_v19, 0.0  ;;  %795 = vst.msk [vmem:[%s2264_s3 + $0x30] sm:$0xff] %vm2282_vm13, %v1251_v22  ;;  %v921_v24 = vsub.f32 %v1251_v22, %v1650_v55  ;;  %v1252_v27 = vpop.f32.mrb[14].mxu1  ;;  %vm2296_vm12 = vmmov %vm2272_vm0 }
 0x353   :  { %v957_v14 = vadd.f32 %v956_v53, %v955_v16  ;;  %v1253_v34 = vpop.f32.mrb[15].mxu1  ;;  %vm2297_vm13 = vmmov %vm2272_vm0 }
 0x354   :  { %v937_v37 = vmul.f32 %v921_v24, %v921_v24  ;;  %v1254_v20 = vadd.f32 %v1253_v34, %v1252_v27 }
 0x356   :  { %v958_v54 = vsel %vm2283_vm14, %v937_v37, 0.0  ;;  %796 = vst.msk [vmem:[%s2264_s3 + $0x38] sm:$0xff] %vm2284_vm15, %v1254_v20  ;;  %v922_v39 = vsub.f32 %v1254_v20, %v1659_v56  ;;  %v1255_v42 = vpop.f32.mrb[16].mxu1  ;;  %vm2298_vm14 = vmmov %vm2272_vm0 }
 0x357   :  { %v959_v26 = vadd.f32 %v958_v54, %v957_v14  ;;  %v1256_v31 = vpop.f32.mrb[17].mxu1  ;;  %vm2299_vm15 = vmmov %vm2272_vm0 }
 0x358   :  { %v938_v10 = vmul.f32 %v922_v39, %v922_v39  ;;  %v1257_v15 = vadd.f32 %v1256_v31, %v1255_v42 }
 0x35a   :  { %v960_v55 = vsel %vm2285_vm1, %v938_v10, 0.0  ;;  %797 = vst.msk [vmem:[%s2264_s3 + $0x40] sm:$0xff] %vm2286_vm2, %v1257_v15  ;;  %v923_v29 = vsub.f32 %v1257_v15, %v1668_v57  ;;  %v1258_v2 = vpop.f32.mrb[18].mxu1  ;;  %vm2300_vm1 = vmmov %vm2272_vm0 }
 0x35b   :  { %v961_v38 = vadd.f32 %v960_v55, %v959_v26  ;;  %v1259_v6 = vpop.f32.mrb[19].mxu1 }
 0x35c   :  { %v939_v32 = vmul.f32 %v923_v29, %v923_v29  ;;  %v1260_v44 = vadd.f32 %v1259_v6, %v1258_v2 }
 0x35e   :  { %v962_v56 = vsel %vm2287_vm3, %v939_v32, 0.0  ;;  %798 = vst.msk [vmem:[%s2264_s3 + $0x48] sm:$0xff] %vm2272_vm0, %v1260_v44  ;;  %v924_v36 = vsub.f32 %v1260_v44, %v1677_v58  ;;  %v1261_v47 = vpop.f32.mrb[20].mxu1 }
 0x35f   :  { %v963_v49 = vadd.f32 %v962_v56, %v961_v38  ;;  %v1262_v5 = vpop.f32.mrb[21].mxu1 }
 0x360   :  { %v940_v18 = vmul.f32 %v924_v36, %v924_v36  ;;  %v1263_v25 = vadd.f32 %v1262_v5, %v1261_v47 }
 0x362   :  { %v964_v57 = vsel %vm2288_vm4, %v940_v18, 0.0  ;;  %799 = vst.msk [vmem:[%s2264_s3 + $0x50] sm:$0xff] %vm2289_vm5, %v1263_v25  ;;  %v925_v28 = vsub.f32 %v1263_v25, %v1686_v59 }
 0x363   :  { %v965_v21 = vadd.f32 %v964_v57, %v963_v49 }
 0x364   :  { %v941_v33 = vmul.f32 %v925_v28, %v925_v28 }
 0x365   :  { %v1264_v41 = vpop.f32.mrb[22].mxu1 }
 0x366   :  { %v966_v46 = vsel %vm2290_vm6, %v941_v33, 0.0  ;;  %v1265_v58 = vpop.f32.mrb[23].mxu1 }
 0x367   :  { %v967_v3 = vadd.f32 %v966_v46, %v965_v21  ;;  %v1266_v50 = vadd.f32 %v1265_v58, %v1264_v41 }
 0x369   :  { %800 = vst.msk [vmem:[%s2264_s3 + $0x58] sm:$0xff] %vm2291_vm7, %v1266_v50  ;;  %v926_v12 = vsub.f32 %v1266_v50, %v1695_v60  ;;  %v1267_v17 = vpop.f32.mrb[24].mxu1 }
 0x36a   :  { %v1268_v23 = vpop.f32.mrb[25].mxu1 }
 0x36b   :  { %v942_v30 = vmul.f32 %v926_v12, %v926_v12  ;;  %v1269_v35 = vadd.f32 %v1268_v23, %v1267_v17 }
 0x36d   :  { %v968_v59 = vsel %vm2292_vm8, %v942_v30, 0.0  ;;  %801 = vst.msk [vmem:[%s2264_s3 + $0x60] sm:$0xff] %vm2293_vm9, %v1269_v35  ;;  %v927_v40 = vsub.f32 %v1269_v35, %v1704_v61  ;;  %v1270_v43 = vpop.f32.mrb[26].mxu1 }
 0x36e   :  { %v969_v51 = vadd.f32 %v968_v59, %v967_v3  ;;  %v1271_v7 = vpop.f32.mrb[27].mxu1 }
 0x36f   :  { %v943_v1 = vmul.f32 %v927_v40, %v927_v40  ;;  %v1272_v45 = vadd.f32 %v1271_v7, %v1270_v43 }
 0x371   :  { %v970_v60 = vsel %vm2294_vm10, %v943_v1, 0.0  ;;  %802 = vst.msk [vmem:[%s2264_s3 + $0x68] sm:$0xff] %vm2295_vm11, %v1272_v45  ;;  %v928_v48 = vsub.f32 %v1272_v45, %v1713_v62 }
 0x372   :  { %v971_v4 = vadd.f32 %v970_v60, %v969_v51 }
 0x373   :  { %v944_v9 = vmul.f32 %v928_v48, %v928_v48 }
 0x375   :  { %v972_v52 = vsel %vm2296_vm12, %v944_v9, 0.0  ;;  %v1273_v11 = vpop.f32.mrb[28].mxu1 }
 0x376   :  { %v1274_v61 = vpop.f32.mrb[29].mxu1  ;;  %v973_v13 = vadd.f32 %v972_v52, %v971_v4 }
 0x377   :  { %v1275_v16 = vadd.f32 %v1274_v61, %v1273_v11 }
 0x379   :  { %803 = vst.msk [vmem:[%s2264_s3 + $0x70] sm:$0xff] %vm2297_vm13, %v1275_v16  ;;  %v929_v8 = vsub.f32 %v1275_v16, %v1722_v63 }
 0x37b   :  { %v945_v19 = vmul.f32 %v929_v8, %v929_v8 }
 0x37d   :  { %v974_v22 = vsel %vm2298_vm14, %v945_v19, 0.0 }
 0x37e   :  { %v975_v53 = vadd.f32 %v974_v22, %v973_v13 }
 0x3c6   :  { %v1276_v62 = vpop.f32.mrb[30].mxu1 }
 0x3c7   :  { %v1277_v24 = vpop.f32.mrb[31].mxu1 }
 0x3c8   :  { %v1278_v27 = vadd.f32 %v1277_v24, %v1276_v62 }
 0x3ca   :  { %804 = vst.msk [vmem:[%s2264_s3 + $0x78] sm:$0xff] %vm2299_vm15, %v1278_v27  ;;  %v930_v14 = vsub.f32 %v1278_v27, %v1731_v0 }
 0x3cc   :  { %v946_v34 = vmul.f32 %v930_v14, %v930_v14 }
 0x3ce   :  { %v976_v37 = vsel %vm2300_vm1, %v946_v34, 0.0 }
 0x3cf   :  { %v977_v20 = vadd.f32 %v976_v37, %v975_v53 }
 0x3d1   :  { %978 = vadd.xlane.f32.xlu1 %v977_v20 }
 0x3d2   :  { %1391 = shalt.err (!%p1388_p4)
}
 0x3d3   :  { %s1392_s21 = scalar_lea.hbm %s2265_s4, 16 }
 0x3d4   :  { %p1393_p5 = scmp.ne.s32.totalorder %s2265_s4, %s1392_s21  ;;  %p1396_p6 = scmp.lt.u32.totalorder %s1392_s21, %s2265_s4 }
 0x3d6   :  { %p1398_p7 = pnand %p1396_p6, %p1393_p5 }
 0x3d8   :  { %1401 = shalt.err (!%p1398_p7)
}
 0x3d9   :  { %1002 = dma.vmem_to_hbm [thread:$0]  %s1000_s17, 16, %s2265_s4, [#allocation3]   ;;  %vm989_vm2 = vcmask 0  }
 0x3da   :  { %s1430_s28 = smov [#allocation4]  }
 0x3db   :  { %s1009_s29 = sshll.u32 %s1430_s28, 4  ;;  %s1010_s29 = int_to_ptr.vmem [resolvable:$true] %s1009_s29 }
 0x3dc   :  { %s1402_s6 = scalar_lea.vmem %s1010_s29, 16  ;;  %s1406_s7 = scalar_lea.vmem %s1010_s29, 32 }
 0x3dd   :  { %p1403_p8 = scmp.ne.s32.totalorder %s1010_s29, %s1402_s6  ;;  %p1407_p9 = scmp.lt.s32.totalorder %s1010_s29, %s1010_s29 }
 0x3de   :  { %p1408_p10 = scmp.lt.s32.totalorder %s1406_s7, %s1402_s6 }
 0x3e0   :  { %p1409_p11 = por %p1408_p10, %p1407_p9 }
 0x3e2   :  { %p1410_p12 = pnand %p1409_p11, %p1403_p8 }
 0x45e   :  { %v979_v63 = vpop.xlane.xlu1 %978 }
 0x45f   :  { %v980_v0 = vrot.slane %v979_v63, 4 }
 0x461   :  { %v981_v54 = vadd.f32 %v980_v0, %v979_v63 }
 0x463   :  { %v982_v39 = vrot.slane %v981_v54, 2 }
 0x465   :  { %v983_v42 = vadd.f32 %v982_v39, %v981_v54 }
 0x467   :  { %v984_v26 = vrot.slane %v983_v42, 1 }
 0x469   :  { %v985_v31 = vadd.f32 %v984_v26, %v983_v42 }
 0x46b   :  { %1359 = vpush %v985_v31 }
 0x49c   :  { %s1360_s30 = spop %1359 }
 0x49d   :  { %v988_v10 = vstv %s1360_s30 }
 0x49e   :  { %990 = vst.msk [vmem:[#allocation4] sm:$0x1] %vm989_vm2, %v988_v10 }
 0x49f   :  { %1413 = shalt.err (!%p1410_p12)
}
 0x4a0   :  { %s1414_s1 = scalar_lea.hbm %s2266_s5, 16 }
 0x4a1   :  { %p1415_p13 = scmp.ne.s32.totalorder %s2266_s5, %s1414_s1  ;;  %p1418_p0 = scmp.lt.u32.totalorder %s1414_s1, %s2266_s5 }
 0x4a3   :  { %p1420_p1 = pnand %p1418_p0, %p1415_p13 }
 0x4a5   :  { %1423 = shalt.err (!%p1420_p1)
}
 0x4a6   :  { %1012 = dma.vmem_to_hbm [thread:$0]  %s1010_s29, 16, %s2266_s5, [#allocation5]  }
 0x4a7   :  { %1424 = dma.done.wait [#allocation3], 16  }
 0x4a8   :  { %1425 = vsyncadd [#allocation3], 4294967280 }
 0x4a9   :  { %1426 = dma.done.wait [#allocation5], 16  }
 0x4aa   :  { %1427 = vsyncadd [#allocation5], 4294967280 }
 0x4ab   :  { %1021 = vsyncpa [#allocation3], 1 }
 0x4ac   :  { %1022 = vsyncpa [#allocation5], 1 }

// kernel: tpu_custom_call.1
= control target key start
LH: loop header
LB: loop body
LE: loop exit
PB: predicated region body
PF: predicated region fallthrough
CT: control target
= control target key end

     0   :  { %11 = vsyncpa [#allocation3], 0  ;;  %vm2267_vm0 = vcmask 261120   ;;  %s2261_s0 = inlined_call_operand.vmem [shape: f32[128,32], index: 0, kind: input, shape index: {}]   ;;  %s2262_s1 = inlined_call_operand.vmem [shape: f32[256,32], index: 1, kind: input, shape index: {}]   ;;  %s2263_s2 = inlined_call_operand.vmem [shape: f32[1,256], index: 2, kind: input, shape index: {}]   ;;  %s2264_s3 = inlined_call_operand.vmem [shape: f32[128,32], index: 3, kind: output, shape index: {0}]   ;;  %s2265_s4 = inlined_call_operand.hbm [shape: s32[1,1,128], index: 4, kind: output, shape index: {1}]   ;;  %s2266_s5 = inlined_call_operand.hbm [shape: f32[1,1,1], index: 5, kind: output, shape index: {2}]  }
   0x1   :  { %v35_v0 = vld [vmem:[%s2262_s1 + $0x80] sm:$0xff]  ;;  %v36_v1 = vld [vmem:[%s2262_s1 + $0x88] sm:$0xff]  ;;  %vm1472_vm1 = vmpackc.low %vm2267_vm0, %vm2267_vm0 }
   0x2   :  { %v19_v2 = vld [vmem:[%s2262_s1] sm:$0xff]  ;;  %v1279_v3 = vpack.c.bf16 %v36_v1, %v35_v0  ;;  %v20_v5 = vld [vmem:[%s2262_s1 + $0x8] sm:$0xff]  ;;  %v37_v6 = vld [vmem:[%s2262_s1 + $0x90] sm:$0xff] }
   0x3   :  { %v1282_v7 = vpack.c.bf16 %v20_v5, %v19_v2  ;;  %v38_v8 = vld [vmem:[%s2262_s1 + $0x98] sm:$0xff]  ;;  %v21_v10 = vld [vmem:[%s2262_s1 + $0x10] sm:$0xff]  ;;  %v39_v12 = vld [vmem:[%s2262_s1 + $0xa0] sm:$0xff] }
   0x4   :  { %1281 = vmatprep.subr.msk.bf16.mxu0 %vm1472_vm1, %v1279_v3  ;;  %v1285_v9 = vpack.c.bf16 %v38_v8, %v37_v6  ;;  %v22_v11 = vld [vmem:[%s2262_s1 + $0x18] sm:$0xff]  ;;  %1328 = vmatprep.subr.bf16.mxu1 %v1279_v3  ;;  %v40_v13 = vld [vmem:[%s2262_s1 + $0xa8] sm:$0xff]  ;;  %v23_v16 = vld [vmem:[%s2262_s1 + $0x20] sm:$0xff] }
   0x5   :  { %1284 = vmatpush3.bf16.xpose.msk.msra.mxu0 %vm1472_vm1, %v1282_v7  ;;  %1330 = vmatpush3.bf16.msra.mxu1 %v1282_v7  ;;  %v1288_v14 = vpack.c.bf16 %v22_v11, %v21_v10  ;;  %v1291_v15 = vpack.c.bf16 %v40_v13, %v39_v12  ;;  %v24_v17 = vld [vmem:[%s2262_s1 + $0x28] sm:$0xff]  ;;  %v41_v18 = vld [vmem:[%s2262_s1 + $0xb0] sm:$0xff]  ;;  %v42_v19 = vld [vmem:[%s2262_s1 + $0xb8] sm:$0xff] }
   0x6   :  { %1287 = vmatprep.subr.msk.bf16.mxu0 %vm1472_vm1, %v1285_v9  ;;  %1332 = vmatprep.subr.bf16.mxu1 %v1285_v9  ;;  %v1294_v20 = vpack.c.bf16 %v24_v17, %v23_v16  ;;  %v1518_v21 = vld [vmem:[%s2261_s0] sm:$0xff]  ;;  %v1297_v22 = vpack.c.bf16 %v42_v19, %v41_v18  ;;  %v25_v23 = vld [vmem:[%s2262_s1 + $0x30] sm:$0xff]  ;;  %v26_v24 = vld [vmem:[%s2262_s1 + $0x38] sm:$0xff] }
   0x7   :  { %1167 = vmatprep.mubr.msk.f32.mxu0 %vm2267_vm0, %v1518_v21  ;;  %v43_v25 = vld [vmem:[%s2262_s1 + $0xc0] sm:$0xff]  ;;  %v44_v26 = vld [vmem:[%s2262_s1 + $0xc8] sm:$0xff]  ;;  %v1300_v27 = vpack.c.bf16 %v26_v24, %v25_v23 }
   0x8   :  { %v1303_v28 = vpack.c.bf16 %v44_v26, %v43_v25  ;;  %v27_v29 = vld [vmem:[%s2262_s1 + $0x40] sm:$0xff]  ;;  %v28_v30 = vld [vmem:[%s2262_s1 + $0x48] sm:$0xff] }
   0x9   :  { %1334 = vmatpush3.bf16.msra.mxu1 %v1288_v14 }
   0xa   :  { %1336 = vmatprep.subr.bf16.mxu1 %v1291_v15 }
   0xd   :  { %1290 = vmatpush3.bf16.xpose.msk.msra.mxu0 %vm1472_vm1, %v1288_v14  ;;  %1338 = vmatpush3.bf16.msra.mxu1 %v1294_v20 }
   0xe   :  { %1293 = vmatprep.subr.msk.bf16.mxu0 %vm1472_vm1, %v1291_v15  ;;  %1340 = vmatprep.subr.bf16.mxu1 %v1297_v22 }
   0xf   :  { %12 = vsyncpa [#allocation5], 0  ;;  %v45_v31 = vld [vmem:[%s2262_s1 + $0xd0] sm:$0xff]  ;;  %v46_v32 = vld [vmem:[%s2262_s1 + $0xd8] sm:$0xff]  ;;  %v1306_v33 = vpack.c.bf16 %v28_v30, %v27_v29  ;;  %v375_v1 = vlaneseq  ;;  %s1429_s16 = smov [#allocation2]  }
  0x10   :  { %v1309_v34 = vpack.c.bf16 %v46_v32, %v45_v31  ;;  %v29_v35 = vld [vmem:[%s2262_s1 + $0x50] sm:$0xff]  ;;  %v30_v36 = vld [vmem:[%s2262_s1 + $0x58] sm:$0xff]  ;;  %v47_v37 = vld [vmem:[%s2262_s1 + $0xe0] sm:$0xff]  ;;  %s999_s17 = sshll.u32 %s1429_s16, 4  ;;  %s1000_s17 = int_to_ptr.vmem [resolvable:$true] %s999_s17 }
  0x11   :  { %1342 = vmatpush3.bf16.msra.mxu1 %v1300_v27  ;;  %v48_v38 = vld [vmem:[%s2262_s1 + $0xe8] sm:$0xff]  ;;  %v1312_v39 = vpack.c.bf16 %v30_v36, %v29_v35  ;;  %v31_v41 = vld [vmem:[%s2262_s1 + $0x60] sm:$0xff]  ;;  %v49_v43 = vld [vmem:[%s2262_s1 + $0xf0] sm:$0xff]  ;;  %v1740_v2 = vshrl.u32 %v375_v1, 7  ;;  %s1380_s18 = scalar_lea.vmem %s1000_s17, 16  ;;  %s1384_s19 = scalar_lea.vmem %s1000_s17, 32 }
  0x12   :  { %1344 = vmatprep.subr.bf16.mxu1 %v1303_v28  ;;  %v1315_v40 = vpack.c.bf16 %v48_v38, %v47_v37  ;;  %v32_v42 = vld [vmem:[%s2262_s1 + $0x68] sm:$0xff]  ;;  %v50_v44 = vld [vmem:[%s2262_s1 + $0xf8] sm:$0xff]  ;;  %v33_v47 = vld [vmem:[%s2262_s1 + $0x70] sm:$0xff]  ;;  %p1381_p0 = scmp.ne.s32.totalorder %s1000_s17, %s1380_s18  ;;  %p1385_p1 = scmp.lt.s32.totalorder %s1000_s17, %s1000_s17 }
  0x13   :  { %v1318_v45 = vpack.c.bf16 %v32_v42, %v31_v41  ;;  %v1321_v46 = vpack.c.bf16 %v50_v44, %v49_v43  ;;  %v34_v48 = vld [vmem:[%s2262_s1 + $0x78] sm:$0xff]  ;;  %v1605_v50 = vld [vmem:[%s2261_s0 + $0x8] sm:$0xff]  ;;  %v1614_v51 = vld [vmem:[%s2261_s0 + $0x10] sm:$0xff]  ;;  %v377_v3 = vsub.s32 0, %v1740_v2  ;;  %v381_v5 = vsub.s32 1, %v1740_v2  ;;  %p1386_p2 = scmp.lt.s32.totalorder %s1384_s19, %s1380_s18 }
  0x14   :  { %v1324_v49 = vpack.c.bf16 %v34_v48, %v33_v47  ;;  %v1623_v52 = vld [vmem:[%s2261_s0 + $0x18] sm:$0xff]  ;;  %v1632_v53 = vld [vmem:[%s2261_s0 + $0x20] sm:$0xff]  ;;  %v1641_v54 = vld [vmem:[%s2261_s0 + $0x28] sm:$0xff] }
  0x15   :  { %1296 = vmatpush3.bf16.xpose.msk.msra.mxu0 %vm1472_vm1, %v1294_v20  ;;  %1346 = vmatpush3.bf16.msra.mxu1 %v1306_v33  ;;  %v1650_v55 = vld [vmem:[%s2261_s0 + $0x30] sm:$0xff]  ;;  %v1659_v56 = vld [vmem:[%s2261_s0 + $0x38] sm:$0xff]  ;;  %v1668_v57 = vld [vmem:[%s2261_s0 + $0x40] sm:$0xff]  ;;  %p1387_p3 = por %p1386_p2, %p1385_p1 }
  0x16   :  { %1299 = vmatprep.subr.msk.bf16.mxu0 %vm1472_vm1, %v1297_v22  ;;  %1348 = vmatprep.subr.bf16.mxu1 %v1309_v34  ;;  %v1677_v58 = vld [vmem:[%s2261_s0 + $0x48] sm:$0xff]  ;;  %v1686_v59 = vld [vmem:[%s2261_s0 + $0x50] sm:$0xff]  ;;  %v1695_v60 = vld [vmem:[%s2261_s0 + $0x58] sm:$0xff] }
  0x17   :  { %v1704_v61 = vld [vmem:[%s2261_s0 + $0x60] sm:$0xff]  ;;  %v1713_v62 = vld [vmem:[%s2261_s0 + $0x68] sm:$0xff]  ;;  %v1722_v63 = vld [vmem:[%s2261_s0 + $0x70] sm:$0xff]  ;;  %p1388_p4 = pnand %p1387_p3, %p1381_p0 }
  0x18   :  { %v1731_v0 = vld [vmem:[%s2261_s0 + $0x78] sm:$0xff]  ;;  %v51_v4 = vld [vmem:[%s2263_s2] sm:$0x3] }
  0x19   :  { %1350 = vmatpush3.bf16.msra.mxu1 %v1312_v39  ;;  %v1747_v6 = vrot.slane %v51_v4, %v377_v3  ;;  %v1749_v7 = vrot.slane %v51_v4, %v381_v5 }
  0x1a   :  { %1352 = vmatprep.subr.bf16.mxu1 %v1315_v40 }
  0x1d   :  { %1302 = vmatpush3.bf16.xpose.msk.msra.mxu0 %vm1472_vm1, %v1300_v27  ;;  %1354 = vmatpush3.bf16.msra.mxu1 %v1318_v45 }
  0x1e   :  { %1305 = vmatprep.subr.msk.bf16.mxu0 %vm1472_vm1, %v1303_v28  ;;  %1356 = vmatprep.subr.bf16.mxu1 %v1321_v46 }
  0x21   :  { %1358 = vmatpush3.bf16.msra.mxu1 %v1324_v49 }
  0x25   :  { %1308 = vmatpush3.bf16.xpose.msk.msra.mxu0 %vm1472_vm1, %v1306_v33 }
  0x26   :  { %1311 = vmatprep.subr.msk.bf16.mxu0 %vm1472_vm1, %v1309_v34 }
  0x2d   :  { %1314 = vmatpush3.bf16.xpose.msk.msra.mxu0 %vm1472_vm1, %v1312_v39 }
  0x2e   :  { %1317 = vmatprep.subr.msk.bf16.mxu0 %vm1472_vm1, %v1315_v40 }
  0x35   :  { %1320 = vmatpush3.bf16.xpose.msk.msra.mxu0 %vm1472_vm1, %v1318_v45 }
  0x36   :  { %1323 = vmatprep.subr.msk.bf16.mxu0 %vm1472_vm1, %v1321_v46 }
  0x3d   :  { %1326 = vmatpush3.bf16.xpose.msk.msra.mxu0 %vm1472_vm1, %v1324_v49 }
  0x44   :  { %1168 = vmatmul.mubr.msk.f32.vlgmr.msra.gmra.mrb[0].mxu0 %vm2267_vm0, %v1518_v21 }
  0x45   :  { %1169 = vmatprep.mubr.msk.f32.mxu0 %vm2267_vm0, %v1605_v50 }
  0x48   :  { %1170 = vmatmul.mubr.msk.f32.gmra.mrb[2].mxu0 %vm2267_vm0, %v1605_v50 }
  0x49   :  { %1171 = vmatprep.mubr.msk.f32.mxu0 %vm2267_vm0, %v1614_v51 }
  0x4c   :  { %1172 = vmatmul.mubr.msk.f32.gmra.mrb[4].mxu0 %vm2267_vm0, %v1614_v51 }
  0x4d   :  { %1173 = vmatprep.mubr.msk.f32.mxu0 %vm2267_vm0, %v1623_v52 }
  0x50   :  { %1174 = vmatmul.mubr.msk.f32.gmra.mrb[6].mxu0 %vm2267_vm0, %v1623_v52 }
  0x51   :  { %1175 = vmatprep.mubr.msk.f32.mxu0 %vm2267_vm0, %v1632_v53 }
  0x54   :  { %1176 = vmatmul.mubr.msk.f32.gmra.mrb[8].mxu0 %vm2267_vm0, %v1632_v53 }
  0x55   :  { %1177 = vmatprep.mubr.msk.f32.mxu0 %vm2267_vm0, %v1641_v54 }
  0x58   :  { %1178 = vmatmul.mubr.msk.f32.gmra.mrb[10].mxu0 %vm2267_vm0, %v1641_v54 }
  0x59   :  { %1179 = vmatprep.mubr.msk.f32.mxu0 %vm2267_vm0, %v1650_v55 }
  0x5c   :  { %1180 = vmatmul.mubr.msk.f32.gmra.mrb[12].mxu0 %vm2267_vm0, %v1650_v55 }
  0x5d   :  { %1181 = vmatprep.mubr.msk.f32.mxu0 %vm2267_vm0, %v1659_v56 }
  0x60   :  { %1182 = vmatmul.mubr.msk.f32.gmra.mrb[14].mxu0 %vm2267_vm0, %v1659_v56 }
  0x61   :  { %1183 = vmatprep.mubr.msk.f32.mxu0 %vm2267_vm0, %v1668_v57 }
  0x64   :  { %1184 = vmatmul.mubr.msk.f32.gmra.mrb[16].mxu0 %vm2267_vm0, %v1668_v57 }
  0x65   :  { %1185 = vmatprep.mubr.msk.f32.mxu0 %vm2267_vm0, %v1677_v58 }
  0x68   :  { %1186 = vmatmul.mubr.msk.f32.gmra.mrb[18].mxu0 %vm2267_vm0, %v1677_v58 }
  0x69   :  { %1187 = vmatprep.mubr.msk.f32.mxu0 %vm2267_vm0, %v1686_v59 }
  0x6c   :  { %1188 = vmatmul.mubr.msk.f32.gmra.mrb[20].mxu0 %vm2267_vm0, %v1686_v59 }
  0x6d   :  { %1189 = vmatprep.mubr.msk.f32.mxu0 %vm2267_vm0, %v1695_v60 }
  0x70   :  { %1190 = vmatmul.mubr.msk.f32.gmra.mrb[22].mxu0 %vm2267_vm0, %v1695_v60 }
  0x71   :  { %1191 = vmatprep.mubr.msk.f32.mxu0 %vm2267_vm0, %v1704_v61 }
  0x74   :  { %1192 = vmatmul.mubr.msk.f32.gmra.mrb[24].mxu0 %vm2267_vm0, %v1704_v61 }
  0x75   :  { %1193 = vmatprep.mubr.msk.f32.mxu0 %vm2267_vm0, %v1713_v62 }
  0x78   :  { %1194 = vmatmul.mubr.msk.f32.gmra.mrb[26].mxu0 %vm2267_vm0, %v1713_v62 }
  0x79   :  { %1195 = vmatprep.mubr.msk.f32.mxu0 %vm2267_vm0, %v1722_v63 }
  0x7c   :  { %1196 = vmatmul.mubr.msk.f32.gmra.mrb[28].mxu0 %vm2267_vm0, %v1722_v63 }
  0x7d   :  { %1197 = vmatprep.mubr.msk.f32.mxu0 %vm2267_vm0, %v1731_v0 }
  0x80   :  { %1198 = vmatmul.mubr.msk.f32.gmra.mrb[30].mxu0 %vm2267_vm0, %v1731_v0 }
 0x117   :  { %v279_v8 = vpop.f32.mrb[0].mxu0 }
 0x118   :  { %v1752_v9 = vsub.f32 %v1747_v6, %v279_v8  ;;  %v281_v10 = vpop.f32.mrb[1].mxu0 }
 0x119   :  { %v1755_v11 = vsub.f32 %v1749_v7, %v281_v10 }
 0x11b   :  { %v285_v12 = vpop.f32.mrb[2].mxu0  ;;  %vm420_vm2 = vcmp.le.f32.partialorder %v1752_v9, %v1755_v11 }
 0x11c   :  { %v1760_v13 = vsub.f32 %v1747_v6, %v285_v12  ;;  %v287_v14 = vpop.f32.mrb[3].mxu0  ;;  %v421_v15 = vsel %vm420_vm2, %v1752_v9, %v1755_v11 }
 0x11d   :  { %v1768_v16 = vsub.f32 %v1749_v7, %v287_v14  ;;  %423 = vmin.index.xlane.f32.xlu0 %v421_v15 }
 0x11f   :  { %vm428_vm3 = vcmp.le.f32.partialorder %v1760_v13, %v1768_v16  ;;  %v291_v17 = vpop.f32.mrb[4].mxu0 }
 0x120   :  { %v429_v18 = vsel %vm428_vm3, %v1760_v13, %v1768_v16  ;;  %v1778_v19 = vsub.f32 %v1747_v6, %v291_v17  ;;  %v293_v20 = vpop.f32.mrb[5].mxu0 }
 0x121   :  { %431 = vmin.index.xlane.f32.xlu1 %v429_v18  ;;  %v1781_v22 = vsub.f32 %v1749_v7, %v293_v20 }
 0x123   :  { %vm436_vm4 = vcmp.le.f32.partialorder %v1778_v19, %v1781_v22  ;;  %v297_v23 = vpop.f32.mrb[6].mxu0 }
 0x124   :  { %v1786_v24 = vsub.f32 %v1747_v6, %v297_v23  ;;  %v299_v25 = vpop.f32.mrb[7].mxu0  ;;  %v437_v26 = vsel %vm436_vm4, %v1778_v19, %v1781_v22 }
 0x125   :  { %v1794_v27 = vsub.f32 %v1749_v7, %v299_v25  ;;  %439 = vmin.index.xlane.f32.xlu1 %v437_v26 }
 0x127   :  { %vm444_vm5 = vcmp.le.f32.partialorder %v1786_v24, %v1794_v27  ;;  %v303_v28 = vpop.f32.mrb[8].mxu0 }
 0x128   :  { %v1799_v29 = vsub.f32 %v1747_v6, %v303_v28  ;;  %v305_v30 = vpop.f32.mrb[9].mxu0  ;;  %v445_v31 = vsel %vm444_vm5, %v1786_v24, %v1794_v27 }
 0x129   :  { %v1807_v32 = vsub.f32 %v1749_v7, %v305_v30  ;;  %447 = vmin.index.xlane.f32.xlu0 %v445_v31 }
 0x12b   :  { %vm452_vm6 = vcmp.le.f32.partialorder %v1799_v29, %v1807_v32  ;;  %v309_v33 = vpop.f32.mrb[10].mxu0 }
 0x12c   :  { %v1812_v34 = vsub.f32 %v1747_v6, %v309_v33  ;;  %v311_v35 = vpop.f32.mrb[11].mxu0  ;;  %v453_v36 = vsel %vm452_vm6, %v1799_v29, %v1807_v32 }
 0x12d   :  { %v1820_v37 = vsub.f32 %v1749_v7, %v311_v35  ;;  %455 = vmin.index.xlane.f32.xlu1 %v453_v36 }
 0x12f   :  { %vm460_vm7 = vcmp.le.f32.partialorder %v1812_v34, %v1820_v37  ;;  %v315_v38 = vpop.f32.mrb[12].mxu0 }
 0x130   :  { %v1825_v39 = vsub.f32 %v1747_v6, %v315_v38  ;;  %v317_v40 = vpop.f32.mrb[13].mxu0  ;;  %v461_v41 = vsel %vm460_vm7, %v1812_v34, %v1820_v37 }
 0x131   :  { %v1833_v42 = vsub.f32 %v1749_v7, %v317_v40  ;;  %463 = vmin.index.xlane.f32.xlu1 %v461_v41 }
 0x133   :  { %vm468_vm8 = vcmp.le.f32.partialorder %v1825_v39, %v1833_v42  ;;  %v321_v43 = vpop.f32.mrb[14].mxu0 }
 0x134   :  { %v1838_v44 = vsub.f32 %v1747_v6, %v321_v43  ;;  %v323_v45 = vpop.f32.mrb[15].mxu0  ;;  %v469_v46 = vsel %vm468_vm8, %v1825_v39, %v1833_v42 }
 0x135   :  { %v1846_v47 = vsub.f32 %v1749_v7, %v323_v45  ;;  %471 = vmin.index.xlane.f32.xlu1 %v469_v46 }
 0x137   :  { %vm476_vm9 = vcmp.le.f32.partialorder %v1838_v44, %v1846_v47  ;;  %v327_v48 = vpop.f32.mrb[16].mxu0 }
 0x138   :  { %v1851_v49 = vsub.f32 %v1747_v6, %v327_v48  ;;  %v329_v3 = vpop.f32.mrb[17].mxu0  ;;  %v477_v4 = vsel %vm476_vm9, %v1838_v44, %v1846_v47 }
 0x139   :  { %v1859_v5 = vsub.f32 %v1749_v7, %v329_v3  ;;  %479 = vmin.index.xlane.f32.xlu1 %v477_v4 }
 0x13b   :  { %vm484_vm10 = vcmp.le.f32.partialorder %v1851_v49, %v1859_v5  ;;  %v333_v8 = vpop.f32.mrb[18].mxu0 }
 0x13c   :  { %v1864_v10 = vsub.f32 %v1747_v6, %v333_v8  ;;  %v335_v12 = vpop.f32.mrb[19].mxu0  ;;  %v485_v14 = vsel %vm484_vm10, %v1851_v49, %v1859_v5 }
 0x13d   :  { %v1872_v15 = vsub.f32 %v1749_v7, %v335_v12  ;;  %487 = vmin.index.xlane.f32.xlu1 %v485_v14 }
 0x13f   :  { %vm492_vm11 = vcmp.le.f32.partialorder %v1864_v10, %v1872_v15  ;;  %v339_v17 = vpop.f32.mrb[20].mxu0 }
 0x140   :  { %v1877_v18 = vsub.f32 %v1747_v6, %v339_v17  ;;  %v341_v20 = vpop.f32.mrb[21].mxu0  ;;  %v493_v23 = vsel %vm492_vm11, %v1864_v10, %v1872_v15 }
 0x141   :  { %v1885_v25 = vsub.f32 %v1749_v7, %v341_v20  ;;  %495 = vmin.index.xlane.f32.xlu1 %v493_v23 }
 0x143   :  { %vm500_vm12 = vcmp.le.f32.partialorder %v1877_v18, %v1885_v25  ;;  %v345_v26 = vpop.f32.mrb[22].mxu0 }
 0x144   :  { %v1890_v28 = vsub.f32 %v1747_v6, %v345_v26  ;;  %v347_v30 = vpop.f32.mrb[23].mxu0  ;;  %v501_v31 = vsel %vm500_vm12, %v1877_v18, %v1885_v25 }
 0x145   :  { %v1898_v33 = vsub.f32 %v1749_v7, %v347_v30  ;;  %503 = vmin.index.xlane.f32.xlu0 %v501_v31 }
 0x147   :  { %vm508_vm13 = vcmp.le.f32.partialorder %v1890_v28, %v1898_v33  ;;  %v351_v35 = vpop.f32.mrb[24].mxu0 }
 0x148   :  { %v1903_v36 = vsub.f32 %v1747_v6, %v351_v35  ;;  %v353_v38 = vpop.f32.mrb[25].mxu0  ;;  %v509_v40 = vsel %vm508_vm13, %v1890_v28, %v1898_v33 }
 0x149   :  { %v1911_v41 = vsub.f32 %v1749_v7, %v353_v38  ;;  %511 = vmin.index.xlane.f32.xlu0 %v509_v40  ;;  %v1960_v38 = vand.u32 127, %v375_v1 }
 0x14b   :  { %vm516_vm14 = vcmp.le.f32.partialorder %v1903_v36, %v1911_v41  ;;  %v357_v43 = vpop.f32.mrb[26].mxu0  ;;  %v809_v18 = vadd.s32 4294967288, %v1960_v38  ;;  %v807_v28 = vsub.s32 %v1960_v38, %v1740_v2 }
 0x14c   :  { %v517_v45 = vsel %vm516_vm14, %v1903_v36, %v1911_v41  ;;  %v1921_v46 = vsub.f32 %v1747_v6, %v357_v43  ;;  %v359_v48 = vpop.f32.mrb[27].mxu0  ;;  %v1428_v36 = vmov 1.0  }
 0x14d   :  { %519 = vmin.index.xlane.f32.xlu0 %v517_v45  ;;  %v1924_v3 = vsub.f32 %v1749_v7, %v359_v48  ;;  %v812_v33 = vsub.s32 %v809_v18, %v1740_v2 }
 0x14f   :  { %vm524_vm15 = vcmp.le.f32.partialorder %v1921_v46, %v1924_v3  ;;  %v363_v4 = vpop.f32.mrb[28].mxu0 }
 0x150   :  { %v525_v8 = vsel %vm524_vm15, %v1921_v46, %v1924_v3  ;;  %v1934_v12 = vsub.f32 %v1747_v6, %v363_v4  ;;  %v365_v14 = vpop.f32.mrb[29].mxu0  ;;  %v816_v46 = vadd.s32 4294967280, %v1960_v38  ;;  %v823_v3 = vadd.s32 4294967272, %v1960_v38 }
 0x151   :  { %527 = vmin.index.xlane.f32.xlu0 %v525_v8  ;;  %v1937_v17 = vsub.f32 %v1749_v7, %v365_v14 }
 0x153   :  { %vm532_vm1 = vcmp.le.f32.partialorder %v1934_v12, %v1937_v17  ;;  %v369_v23 = vpop.f32.mrb[30].mxu0 }
 0x154   :  { %v533_v20 = vsel %vm532_vm1, %v1934_v12, %v1937_v17  ;;  %v1947_v26 = vsub.f32 %v1747_v6, %v369_v23  ;;  %v371_v30 = vpop.f32.mrb[31].mxu0  ;;  %v1963_v6 = vadd.s32 128, %v1960_v38 }
 0x155   :  { %535 = vmin.index.xlane.f32.xlu0 %v533_v20  ;;  %v1950_v31 = vsub.f32 %v1749_v7, %v371_v30  ;;  %v819_v30 = vsub.s32 %v816_v46, %v1740_v2 }
 0x156   :  { %v422_v7 = vsel %vm420_vm2, %v1960_v38, %v1963_v6  ;;  %v430_v1 = vsel %vm428_vm3, %v1960_v38, %v1963_v6  ;;  %v438_v9 = vsel %vm436_vm4, %v1960_v38, %v1963_v6  ;;  %v446_v11 = vsel %vm444_vm5, %v1960_v38, %v1963_v6 }
 0x157   :  { %vm540_vm0 = vcmp.le.f32.partialorder %v1947_v26, %v1950_v31  ;;  %v462_v8 = vsel %vm460_vm7, %v1960_v38, %v1963_v6  ;;  %v470_v24 = vsel %vm468_vm8, %v1960_v38, %v1963_v6  ;;  %v494_v34 = vsel %vm492_vm11, %v1960_v38, %v1963_v6 }
 0x158   :  { %v541_v35 = vsel %vm540_vm0, %v1947_v26, %v1950_v31  ;;  %v518_v39 = vsel %vm516_vm14, %v1960_v38, %v1963_v6  ;;  %v454_v42 = vsel %vm452_vm6, %v1960_v38, %v1963_v6  ;;  %v478_v10 = vsel %vm476_vm9, %v1960_v38, %v1963_v6 }
 0x159   :  { %v486_v15 = vsel %vm484_vm10, %v1960_v38, %v1963_v6  ;;  %v502_v29 = vsel %vm500_vm12, %v1960_v38, %v1963_v6  ;;  %v510_v32 = vsel %vm508_vm13, %v1960_v38, %v1963_v6  ;;  %v526_v47 = vsel %vm524_vm15, %v1960_v38, %v1963_v6 }
 0x15a   :  { %v534_v5 = vsel %vm532_vm1, %v1960_v38, %v1963_v6  ;;  %vm814_vm4 = vcmask 130112   ;;  %vm821_vm7 = vcmask 195712   ;;  %vm828_vm8 = vcmask 261312  }
 0x15b   :  { %vm835_vm13 = vcmask 326912   ;;  %vm842_vm14 = vcmask 392512  }
 0x1aa   :  { %v424_v40 = vpop.xlane.xlu0 %423 }
 0x1ab   :  { %1364 = vset.pattern.permute.xlu0 %v424_v40 }
 0x1ae   :  { %v432_v43 = vpop.xlane.xlu1 %431 }
 0x1af   :  { %1365 = vset.pattern.permute.xlu1 %v432_v43  ;;  %426 = vperm.xlu0 %1364, %v422_v7  }
 0x1b2   :  { %v440_v45 = vpop.xlane.xlu1 %439 }
 0x1b3   :  { %434 = vperm.xlu1 %1365, %v430_v1  }
 0x1b6   :  { %v448_v48 = vpop.xlane.xlu0 %447 }
 0x1b7   :  { %1366 = vset.pattern.permute.xlu1 %v440_v45  ;;  %1367 = vset.pattern.permute.xlu0 %v448_v48 }
 0x1ba   :  { %v456_v4 = vpop.xlane.xlu1 %455 }
 0x1bb   :  { %442 = vperm.xlu1 %1366, %v438_v9   ;;  %450 = vperm.xlu0 %1367, %v446_v11   ;;  %v837_v9 = vadd.s32 4294967256, %v1960_v38  ;;  %v844_v11 = vadd.s32 4294967248, %v1960_v38 }
 0x1be   :  { %v464_v13 = vpop.xlane.xlu1 %463 }
 0x1bf   :  { %1369 = vset.pattern.permute.xlu0 %v464_v13  ;;  %1368 = vset.pattern.permute.xlu1 %v456_v4  ;;  %v830_v4 = vadd.s32 4294967264, %v1960_v38 }
 0x1c2   :  { %v472_v16 = vpop.xlane.xlu1 %471 }
 0x1c3   :  { %466 = vperm.xlu0 %1369, %v462_v8   ;;  %v833_v8 = vsub.s32 %v830_v4, %v1740_v2 }
 0x1c6   :  { %v480_v19 = vpop.xlane.xlu1 %479 }
 0x1c7   :  { %1370 = vset.pattern.permute.xlu0 %v472_v16 }
 0x1ca   :  { %v488_v22 = vpop.xlane.xlu1 %487 }
 0x1cb   :  { %474 = vperm.xlu0 %1370, %v470_v24  }
 0x1ce   :  { %v496_v27 = vpop.xlane.xlu1 %495 }
 0x1cf   :  { %1373 = vset.pattern.permute.xlu0 %v496_v27 }
 0x1d2   :  { %v504_v14 = vpop.xlane.xlu0 %503 }
 0x1d3   :  { %498 = vperm.xlu0 %1373, %v494_v34   ;;  %v851_v34 = vadd.s32 4294967240, %v1960_v38 }
 0x1d5   :  { %v854_v31 = vsub.s32 %v851_v34, %v1740_v2 }
 0x1d6   :  { %v512_v37 = vpop.xlane.xlu0 %511 }
 0x1da   :  { %v520_v20 = vpop.xlane.xlu0 %519 }
 0x1db   :  { %1376 = vset.pattern.permute.xlu0 %v520_v20 }
 0x1de   :  { %v528_v44 = vpop.xlane.xlu0 %527 }
 0x1df   :  { %522 = vperm.xlu0 %1376, %v518_v39   ;;  %543 = vmin.index.xlane.f32.xlu1 %v541_v35  ;;  %v826_v35 = vsub.s32 %v823_v3, %v1740_v2 }
 0x1e2   :  { %v536_v49 = vpop.xlane.xlu0 %535 }
 0x1f0   :  { %458 = vperm.xlu1 %1368, %v454_v42  }
 0x1f4   :  { %1371 = vset.pattern.permute.xlu1 %v480_v19  ;;  %v840_v19 = vsub.s32 %v837_v9, %v1740_v2 }
 0x1f8   :  { %482 = vperm.xlu1 %1371, %v478_v10  }
 0x1fc   :  { %1372 = vset.pattern.permute.xlu1 %v488_v22  ;;  %v847_v22 = vsub.s32 %v844_v11, %v1740_v2 }
 0x200   :  { %490 = vperm.xlu1 %1372, %v486_v15  }
 0x204   :  { %1374 = vset.pattern.permute.xlu1 %v504_v14  ;;  %v542_v14 = vsel %vm540_vm0, %v1960_v38, %v1963_v6 }
 0x208   :  { %506 = vperm.xlu1 %1374, %v502_v29  }
 0x20c   :  { %1375 = vset.pattern.permute.xlu1 %v512_v37 }
 0x210   :  { %514 = vperm.xlu1 %1375, %v510_v32   ;;  %v858_v32 = vadd.s32 4294967232, %v1960_v38 }
 0x214   :  { %1377 = vset.pattern.permute.xlu1 %v528_v44  ;;  %v865_v44 = vadd.s32 4294967224, %v1960_v38 }
 0x218   :  { %530 = vperm.xlu1 %1377, %v526_v47  }
 0x21c   :  { %1378 = vset.pattern.permute.xlu1 %v536_v49  ;;  %v861_v49 = vsub.s32 %v858_v32, %v1740_v2 }
 0x220   :  { %538 = vperm.xlu1 %1378, %v534_v5   ;;  %v868_v5 = vsub.s32 %v865_v44, %v1740_v2 }
 0x22e   :  { %v427_v25 = vpop.permute.xlu0 %426 }
 0x22f   :  { %vm549_vm2 = vcmp.eq.s32.totalorder %v427_v25, %v1963_v6  ;;  %vm548_vm3 = vcmp.eq.s32.totalorder %v427_v25, %v1960_v38  ;;  %v808_v12 = vrot.slane %v427_v25, %v807_v28 }
 0x230   :  { %1103 = vmatprep.mubr.msk.f32.mxu1 %vm549_vm2, %v1428_v36  ;;  %vm849_vm2 = vcmask 458112  }
 0x231   :  { %1104 = vmatmul.mubr.msk.f32.vlgmr.msra.gmra.mrb[0].mxu1 %vm548_vm3, %v1428_v36 }
 0x232   :  { %v435_v41 = vpop.permute.xlu1 %434 }
 0x233   :  { %v813_v17 = vrot.slane %v435_v41, %v812_v33  ;;  %vm551_vm5 = vcmp.eq.s32.totalorder %v435_v41, %v1963_v6  ;;  %vm550_vm6 = vcmp.eq.s32.totalorder %v435_v41, %v1960_v38  ;;  %v872_v33 = vadd.s32 4294967216, %v1960_v38 }
 0x234   :  { %1105 = vmatprep.mubr.msk.f32.mxu1 %vm551_vm5, %v1428_v36 }
 0x235   :  { %v815_v23 = vsel %vm814_vm4, %v813_v17, %v808_v12  ;;  %1106 = vmatmul.mubr.msk.f32.gmra.mrb[2].mxu1 %vm550_vm6, %v1428_v36  ;;  %vm856_vm4 = vcmask 523712   ;;  %v875_v12 = vsub.s32 %v872_v33, %v1740_v2 }
 0x23a   :  { %v443_v40 = vpop.permute.xlu1 %442  ;;  %v451_v43 = vpop.permute.xlu0 %450 }
 0x23b   :  { %v820_v7 = vrot.slane %v443_v40, %v819_v30  ;;  %v827_v1 = vrot.slane %v451_v43, %v826_v35  ;;  %vm553_vm9 = vcmp.eq.s32.totalorder %v443_v40, %v1963_v6  ;;  %vm552_vm10 = vcmp.eq.s32.totalorder %v443_v40, %v1960_v38 }
 0x23c   :  { %1107 = vmatprep.mubr.msk.f32.mxu1 %vm553_vm9, %v1428_v36  ;;  %vm555_vm11 = vcmp.eq.s32.totalorder %v451_v43, %v1963_v6  ;;  %vm554_vm12 = vcmp.eq.s32.totalorder %v451_v43, %v1960_v38  ;;  %vm863_vm9 = vcmask 589312   ;;  %v879_v30 = vadd.s32 4294967208, %v1960_v38 }
 0x23d   :  { %v822_v45 = vsel %vm821_vm7, %v820_v7, %v815_v23  ;;  %1108 = vmatmul.mubr.msk.f32.gmra.mrb[4].mxu1 %vm552_vm10, %v1428_v36  ;;  %v886_v43 = vadd.s32 4294967200, %v1960_v38 }
 0x23e   :  { %v829_v48 = vsel %vm828_vm8, %v827_v1, %v822_v45  ;;  %1109 = vmatprep.mubr.msk.f32.mxu1 %vm555_vm11, %v1428_v36  ;;  %vm870_vm11 = vcmask 654912   ;;  %v882_v40 = vsub.s32 %v879_v30, %v1740_v2 }
 0x23f   :  { %v889_v9 = vsub.s32 %v886_v43, %v1740_v2 }
 0x241   :  { %1110 = vmatmul.mubr.msk.f32.gmra.mrb[6].mxu1 %vm554_vm12, %v1428_v36 }
 0x242   :  { %v467_v13 = vpop.permute.xlu0 %466 }
 0x243   :  { %v841_v20 = vrot.slane %v467_v13, %v840_v19  ;;  %vm559_vm3 = vcmp.eq.s32.totalorder %v467_v13, %v1963_v6  ;;  %vm558_vm0 = vcmp.eq.s32.totalorder %v467_v13, %v1960_v38 }
 0x24a   :  { %v475_v24 = vpop.permute.xlu0 %474 }
 0x24b   :  { %v848_v39 = vrot.slane %v475_v24, %v847_v22  ;;  %vm561_vm5 = vcmp.eq.s32.totalorder %v475_v24, %v1963_v6  ;;  %vm560_vm6 = vcmp.eq.s32.totalorder %v475_v24, %v1960_v38 }
 0x252   :  { %v499_v18 = vpop.permute.xlu0 %498 }
 0x253   :  { %v869_v41 = vrot.slane %v499_v18, %v868_v5 }
 0x25e   :  { %v523_v7 = vpop.permute.xlu0 %522 }
 0x25f   :  { %v890_v13 = vrot.slane %v523_v7, %v889_v9 }
 0x26c   :  { %v544_v16 = vpop.xlane.xlu1 %543 }
 0x26d   :  { %1379 = vset.pattern.permute.xlu0 %v544_v16 }
 0x270   :  { %v459_v27 = vpop.permute.xlu1 %458 }
 0x271   :  { %v834_v37 = vrot.slane %v459_v27, %v833_v8  ;;  %546 = vperm.xlu0 %1379, %v542_v14   ;;  %vm557_vm15 = vcmp.eq.s32.totalorder %v459_v27, %v1963_v6  ;;  %vm556_vm1 = vcmp.eq.s32.totalorder %v459_v27, %v1960_v38  ;;  %v900_v27 = vadd.s32 4294967184, %v1960_v38 }
 0x272   :  { %1111 = vmatprep.mubr.msk.f32.mxu1 %vm557_vm15, %v1428_v36  ;;  %vm877_vm15 = vcmask 720512   ;;  %v907_v14 = vadd.s32 4294967176, %v1960_v38 }
 0x273   :  { %v836_v42 = vsel %vm835_vm13, %v834_v37, %v829_v48  ;;  %1112 = vmatmul.mubr.msk.f32.gmra.mrb[8].mxu1 %vm556_vm1, %v1428_v36  ;;  %vm567_vm13 = vcmp.eq.s32.totalorder %v499_v18, %v1963_v6  ;;  %v893_v48 = vadd.s32 4294967192, %v1960_v38  ;;  %v903_v34 = vsub.s32 %v900_v27, %v1740_v2 }
 0x274   :  { %v843_v26 = vsel %vm842_vm14, %v841_v20, %v836_v42  ;;  %1113 = vmatprep.mubr.msk.f32.mxu1 %vm559_vm3, %v1428_v36  ;;  %vm566_vm14 = vcmp.eq.s32.totalorder %v499_v18, %v1960_v38  ;;  %vm884_vm3 = vcmask 786112   ;;  %v910_v37 = vsub.s32 %v907_v14, %v1740_v2 }
 0x275   :  { %v850_v10 = vsel %vm849_vm2, %v848_v39, %v843_v26  ;;  %v896_v11 = vsub.s32 %v893_v48, %v1740_v2 }
 0x277   :  { %1114 = vmatmul.mubr.msk.f32.gmra.mrb[10].mxu1 %vm558_vm0, %v1428_v36  ;;  %v483_v15 = vpop.permute.xlu1 %482 }
 0x278   :  { %v855_v29 = vrot.slane %v483_v15, %v854_v31  ;;  %1115 = vmatprep.mubr.msk.f32.mxu1 %vm561_vm5, %v1428_v36  ;;  %vm563_vm7 = vcmp.eq.s32.totalorder %v483_v15, %v1963_v6  ;;  %vm562_vm8 = vcmp.eq.s32.totalorder %v483_v15, %v1960_v38  ;;  %vm573_vm5 = vcmp.eq.s32.totalorder %v523_v7, %v1963_v6 }
 0x27a   :  { %v857_v47 = vsel %vm856_vm4, %v855_v29, %v850_v10 }
 0x27b   :  { %1116 = vmatmul.mubr.msk.f32.gmra.mrb[12].mxu1 %vm560_vm6, %v1428_v36  ;;  %vm572_vm6 = vcmp.eq.s32.totalorder %v523_v7, %v1960_v38 }
 0x27c   :  { %1117 = vmatprep.mubr.msk.f32.mxu1 %vm563_vm7, %v1428_v36  ;;  %vm891_vm7 = vcmask 851712  }
 0x27f   :  { %1118 = vmatmul.mubr.msk.f32.gmra.mrb[14].mxu1 %vm562_vm8, %v1428_v36  ;;  %v491_v25 = vpop.permute.xlu1 %490  ;;  %vm898_vm8 = vcmask 917312  }
 0x280   :  { %v862_v28 = vrot.slane %v491_v25, %v861_v49  ;;  %vm565_vm10 = vcmp.eq.s32.totalorder %v491_v25, %v1963_v6  ;;  %vm564_vm12 = vcmp.eq.s32.totalorder %v491_v25, %v1960_v38 }
 0x281   :  { %1119 = vmatprep.mubr.msk.f32.mxu1 %vm565_vm10, %v1428_v36 }
 0x282   :  { %v864_v46 = vsel %vm863_vm9, %v862_v28, %v857_v47 }
 0x283   :  { %1120 = vmatmul.mubr.msk.f32.gmra.mrb[16].mxu1 %vm564_vm12, %v1428_v36  ;;  %v871_v3 = vsel %vm870_vm11, %v869_v41, %v864_v46 }
 0x284   :  { %1121 = vmatprep.mubr.msk.f32.mxu1 %vm567_vm13, %v1428_v36  ;;  %vm905_vm13 = vcmask 982912  }
 0x287   :  { %1122 = vmatmul.mubr.msk.f32.gmra.mrb[18].mxu1 %vm566_vm14, %v1428_v36  ;;  %v507_v17 = vpop.permute.xlu1 %506  ;;  %vm912_vm14 = vcmask 1048512  }
 0x288   :  { %v876_v23 = vrot.slane %v507_v17, %v875_v12  ;;  %vm569_vm1 = vcmp.eq.s32.totalorder %v507_v17, %v1963_v6  ;;  %vm568_vm2 = vcmp.eq.s32.totalorder %v507_v17, %v1960_v38 }
 0x289   :  { %1123 = vmatprep.mubr.msk.f32.mxu1 %vm569_vm1, %v1428_v36 }
 0x28a   :  { %v878_v35 = vsel %vm877_vm15, %v876_v23, %v871_v3 }
 0x28b   :  { %1124 = vmatmul.mubr.msk.f32.gmra.mrb[20].mxu1 %vm568_vm2, %v1428_v36  ;;  %vm2270_vm2 = vcmask 261120  }
 0x28f   :  { %v515_v1 = vpop.permute.xlu1 %514 }
 0x290   :  { %v883_v45 = vrot.slane %v515_v1, %v882_v40  ;;  %vm571_vm0 = vcmp.eq.s32.totalorder %v515_v1, %v1963_v6  ;;  %vm570_vm4 = vcmp.eq.s32.totalorder %v515_v1, %v1960_v38 }
 0x291   :  { %1125 = vmatprep.mubr.msk.f32.mxu1 %vm571_vm0, %v1428_v36  ;;  %vm2272_vm0 = vmmov %vm2270_vm2 }
 0x292   :  { %v885_v4 = vsel %vm884_vm3, %v883_v45, %v878_v35  ;;  %1126 = vmatmul.mubr.msk.f32.gmra.mrb[22].mxu1 %vm570_vm4, %v1428_v36  ;;  %vm2271_vm3 = vmmov %vm2270_vm2 }
 0x293   :  { %1127 = vmatprep.mubr.msk.f32.mxu1 %vm573_vm5, %v1428_v36  ;;  %v892_v19 = vsel %vm891_vm7, %v890_v13, %v885_v4  ;;  %vm2273_vm4 = vmmov %vm2272_vm0 }
 0x294   :  { %vm2274_vm5 = vmmov %vm2272_vm0 }
 0x295   :  { %vm2276_vm7 = vmmov %vm2272_vm0 }
 0x296   :  { %1128 = vmatmul.mubr.msk.f32.gmra.mrb[24].mxu1 %vm572_vm6, %v1428_v36  ;;  %vm2275_vm6 = vmmov %vm2272_vm0 }
 0x297   :  { %v531_v16 = vpop.permute.xlu1 %530 }
 0x298   :  { %v897_v8 = vrot.slane %v531_v16, %v896_v11  ;;  %vm575_vm9 = vcmp.eq.s32.totalorder %v531_v16, %v1963_v6  ;;  %vm574_vm10 = vcmp.eq.s32.totalorder %v531_v16, %v1960_v38 }
 0x299   :  { %1129 = vmatprep.mubr.msk.f32.mxu1 %vm575_vm9, %v1428_v36  ;;  %vm2278_vm9 = vmmov %vm2272_vm0 }
 0x29a   :  { %1130 = vmatmul.mubr.msk.f32.gmra.mrb[26].mxu1 %vm574_vm10, %v1428_v36  ;;  %v899_v22 = vsel %vm898_vm8, %v897_v8, %v892_v19  ;;  %vm2277_vm8 = vmmov %vm2272_vm0 }
 0x29b   :  { %vm2279_vm10 = vmmov %vm2272_vm0 }
 0x29f   :  { %v539_v24 = vpop.permute.xlu1 %538 }
 0x2a0   :  { %vm577_vm11 = vcmp.eq.s32.totalorder %v539_v24, %v1963_v6  ;;  %vm576_vm12 = vcmp.eq.s32.totalorder %v539_v24, %v1960_v38  ;;  %v904_v20 = vrot.slane %v539_v24, %v903_v34 }
 0x2a1   :  { %1131 = vmatprep.mubr.msk.f32.mxu1 %vm577_vm11, %v1428_v36  ;;  %vm2280_vm11 = vmmov %vm2272_vm0 }
 0x2a2   :  { %1132 = vmatmul.mubr.msk.f32.gmra.mrb[28].mxu1 %vm576_vm12, %v1428_v36  ;;  %v906_v26 = vsel %vm905_vm13, %v904_v20, %v899_v22  ;;  %vm2281_vm12 = vmmov %vm2272_vm0 }
 0x2a3   :  { %vm2282_vm13 = vmmov %vm2272_vm0 }
 0x2f0   :  { %v547_v39 = vpop.permute.xlu0 %546 }
 0x2f1   :  { %vm578_vm15 = vcmp.eq.s32.totalorder %v547_v39, %v1960_v38  ;;  %vm579_vm1 = vcmp.eq.s32.totalorder %v547_v39, %v1963_v6  ;;  %v911_v42 = vrot.slane %v547_v39, %v910_v37 }
 0x2f2   :  { %1133 = vmatprep.mubr.msk.f32.mxu1 %vm579_vm1, %v1428_v36  ;;  %vm2285_vm1 = vmmov %vm2272_vm0 }
 0x2f3   :  { %1134 = vmatmul.mubr.msk.f32.gmra.mrb[30].mxu1 %vm578_vm15, %v1428_v36  ;;  %v913_v31 = vsel %vm912_vm14, %v911_v42, %v906_v26  ;;  %vm2283_vm14 = vmmov %vm2272_vm0 }
 0x2f4   :  { %914 = vst [vmem:[#allocation2] sm:$0x1] %v913_v31  ;;  %vm2284_vm15 = vmmov %vm2272_vm0 }
 0x304   :  { %v1231_v10 = vpop.f32.mrb[0].mxu1 }
 0x305   :  { %v1232_v15 = vpop.f32.mrb[1].mxu1 }
 0x306   :  { %v1233_v29 = vadd.f32 %v1232_v15, %v1231_v10 }
 0x308   :  { %789 = vst.msk [vmem:[%s2264_s3] sm:$0xff] %vm2270_vm2, %v1233_v29  ;;  %v915_v2 = vsub.f32 %v1233_v29, %v1518_v21  ;;  %v1234_v38 = vpop.f32.mrb[2].mxu1  ;;  %vm2286_vm2 = vmmov %vm2272_vm0 }
 0x309   :  { %v1235_v6 = vpop.f32.mrb[3].mxu1 }
 0x30a   :  { %v1236_v32 = vadd.f32 %v1235_v6, %v1234_v38  ;;  %v931_v44 = vmul.f32 %v915_v2, %v915_v2 }
 0x30c   :  { %790 = vst.msk [vmem:[%s2264_s3 + $0x8] sm:$0xff] %vm2271_vm3, %v1236_v32  ;;  %v916_v36 = vsub.f32 %v1236_v32, %v1605_v50  ;;  %v947_v49 = vsel %vm2272_vm0, %v931_v44, 0.0  ;;  %vm2287_vm3 = vmmov %vm2272_vm0 }
 0x30e   :  { %v932_v47 = vmul.f32 %v916_v36, %v916_v36 }
 0x310   :  { %v948_v5 = vsel %vm2273_vm4, %v932_v47, 0.0  ;;  %v1237_v18 = vpop.f32.mrb[4].mxu1  ;;  %vm2288_vm4 = vmmov %vm2272_vm0 }
 0x311   :  { %v949_v25 = vadd.f32 %v948_v5, %v947_v49  ;;  %v1238_v28 = vpop.f32.mrb[5].mxu1 }
 0x312   :  { %v1239_v21 = vadd.f32 %v1238_v28, %v1237_v18 }
 0x314   :  { %791 = vst.msk [vmem:[%s2264_s3 + $0x10] sm:$0xff] %vm2274_vm5, %v1239_v21  ;;  %v917_v33 = vsub.f32 %v1239_v21, %v1614_v51  ;;  %v1240_v41 = vpop.f32.mrb[6].mxu1  ;;  %vm2289_vm5 = vmmov %vm2272_vm0 }
 0x315   :  { %v1241_v46 = vpop.f32.mrb[7].mxu1 }
 0x316   :  { %v933_v3 = vmul.f32 %v917_v33, %v917_v33  ;;  %v1242_v50 = vadd.f32 %v1241_v46, %v1240_v41 }
 0x318   :  { %v950_v12 = vsel %vm2275_vm6, %v933_v3, 0.0  ;;  %792 = vst.msk [vmem:[%s2264_s3 + $0x18] sm:$0xff] %vm2276_vm7, %v1242_v50  ;;  %v918_v17 = vsub.f32 %v1242_v50, %v1623_v52  ;;  %vm2290_vm6 = vmmov %vm2272_vm0 }
 0x319   :  { %v951_v23 = vadd.f32 %v950_v12, %v949_v25  ;;  %vm2291_vm7 = vmmov %vm2272_vm0 }
 0x31a   :  { %v934_v30 = vmul.f32 %v918_v17, %v918_v17 }
 0x31c   :  { %v952_v35 = vsel %vm2277_vm8, %v934_v30, 0.0  ;;  %vm2292_vm8 = vmmov %vm2272_vm0 }
 0x31d   :  { %v953_v40 = vadd.f32 %v952_v35, %v951_v23 }
 0x346   :  { %v1243_v43 = vpop.f32.mrb[8].mxu1 }
 0x347   :  { %v1244_v51 = vpop.f32.mrb[9].mxu1 }
 0x348   :  { %v1245_v7 = vadd.f32 %v1244_v51, %v1243_v43 }
 0x34a   :  { %793 = vst.msk [vmem:[%s2264_s3 + $0x20] sm:$0xff] %vm2278_vm9, %v1245_v7  ;;  %v919_v1 = vsub.f32 %v1245_v7, %v1632_v53  ;;  %v1246_v45 = vpop.f32.mrb[10].mxu1  ;;  %vm2293_vm9 = vmmov %vm2272_vm0 }
 0x34b   :  { %v1247_v48 = vpop.f32.mrb[11].mxu1 }
 0x34c   :  { %v935_v4 = vmul.f32 %v919_v1, %v919_v1  ;;  %v1248_v9 = vadd.f32 %v1247_v48, %v1246_v45 }
 0x34e   :  { %v954_v52 = vsel %vm2279_vm10, %v935_v4, 0.0  ;;  %794 = vst.msk [vmem:[%s2264_s3 + $0x28] sm:$0xff] %vm2280_vm11, %v1248_v9  ;;  %v920_v11 = vsub.f32 %v1248_v9, %v1641_v54  ;;  %v1249_v13 = vpop.f32.mrb[12].mxu1  ;;  %vm2294_vm10 = vmmov %vm2272_vm0 }
 0x34f   :  { %v955_v16 = vadd.f32 %v954_v52, %v953_v40  ;;  %v1250_v8 = vpop.f32.mrb[13].mxu1  ;;  %vm2295_vm11 = vmmov %vm2272_vm0 }
 0x350   :  { %v936_v19 = vmul.f32 %v920_v11, %v920_v11  ;;  %v1251_v22 = vadd.f32 %v1250_v8, %v1249_v13 }
 0x352   :  { %v956_v53 = vsel %vm2281_vm12, %v936_v19, 0.0  ;;  %795 = vst.msk [vmem:[%s2264_s3 + $0x30] sm:$0xff] %vm2282_vm13, %v1251_v22  ;;  %v921_v24 = vsub.f32 %v1251_v22, %v1650_v55  ;;  %v1252_v27 = vpop.f32.mrb[14].mxu1  ;;  %vm2296_vm12 = vmmov %vm2272_vm0 }
 0x353   :  { %v957_v14 = vadd.f32 %v956_v53, %v955_v16  ;;  %v1253_v34 = vpop.f32.mrb[15].mxu1  ;;  %vm2297_vm13 = vmmov %vm2272_vm0 }
 0x354   :  { %v937_v37 = vmul.f32 %v921_v24, %v921_v24  ;;  %v1254_v20 = vadd.f32 %v1253_v34, %v1252_v27 }
 0x356   :  { %v958_v54 = vsel %vm2283_vm14, %v937_v37, 0.0  ;;  %796 = vst.msk [vmem:[%s2264_s3 + $0x38] sm:$0xff] %vm2284_vm15, %v1254_v20  ;;  %v922_v39 = vsub.f32 %v1254_v20, %v1659_v56  ;;  %v1255_v42 = vpop.f32.mrb[16].mxu1  ;;  %vm2298_vm14 = vmmov %vm2272_vm0 }
 0x357   :  { %v959_v26 = vadd.f32 %v958_v54, %v957_v14  ;;  %v1256_v31 = vpop.f32.mrb[17].mxu1  ;;  %vm2299_vm15 = vmmov %vm2272_vm0 }
 0x358   :  { %v938_v10 = vmul.f32 %v922_v39, %v922_v39  ;;  %v1257_v15 = vadd.f32 %v1256_v31, %v1255_v42 }
 0x35a   :  { %v960_v55 = vsel %vm2285_vm1, %v938_v10, 0.0  ;;  %797 = vst.msk [vmem:[%s2264_s3 + $0x40] sm:$0xff] %vm2286_vm2, %v1257_v15  ;;  %v923_v29 = vsub.f32 %v1257_v15, %v1668_v57  ;;  %v1258_v2 = vpop.f32.mrb[18].mxu1  ;;  %vm2300_vm1 = vmmov %vm2272_vm0 }
 0x35b   :  { %v961_v38 = vadd.f32 %v960_v55, %v959_v26  ;;  %v1259_v6 = vpop.f32.mrb[19].mxu1 }
 0x35c   :  { %v939_v32 = vmul.f32 %v923_v29, %v923_v29  ;;  %v1260_v44 = vadd.f32 %v1259_v6, %v1258_v2 }
 0x35e   :  { %v962_v56 = vsel %vm2287_vm3, %v939_v32, 0.0  ;;  %798 = vst.msk [vmem:[%s2264_s3 + $0x48] sm:$0xff] %vm2272_vm0, %v1260_v44  ;;  %v924_v36 = vsub.f32 %v1260_v44, %v1677_v58  ;;  %v1261_v47 = vpop.f32.mrb[20].mxu1 }
 0x35f   :  { %v963_v49 = vadd.f32 %v962_v56, %v961_v38  ;;  %v1262_v5 = vpop.f32.mrb[21].mxu1 }
 0x360   :  { %v940_v18 = vmul.f32 %v924_v36, %v924_v36  ;;  %v1263_v25 = vadd.f32 %v1262_v5, %v1261_v47 }
 0x362   :  { %v964_v57 = vsel %vm2288_vm4, %v940_v18, 0.0  ;;  %799 = vst.msk [vmem:[%s2264_s3 + $0x50] sm:$0xff] %vm2289_vm5, %v1263_v25  ;;  %v925_v28 = vsub.f32 %v1263_v25, %v1686_v59 }
 0x363   :  { %v965_v21 = vadd.f32 %v964_v57, %v963_v49 }
 0x364   :  { %v941_v33 = vmul.f32 %v925_v28, %v925_v28 }
 0x365   :  { %v1264_v41 = vpop.f32.mrb[22].mxu1 }
 0x366   :  { %v966_v46 = vsel %vm2290_vm6, %v941_v33, 0.0  ;;  %v1265_v58 = vpop.f32.mrb[23].mxu1 }
 0x367   :  { %v967_v3 = vadd.f32 %v966_v46, %v965_v21  ;;  %v1266_v50 = vadd.f32 %v1265_v58, %v1264_v41 }
 0x369   :  { %800 = vst.msk [vmem:[%s2264_s3 + $0x58] sm:$0xff] %vm2291_vm7, %v1266_v50  ;;  %v926_v12 = vsub.f32 %v1266_v50, %v1695_v60  ;;  %v1267_v17 = vpop.f32.mrb[24].mxu1 }
 0x36a   :  { %v1268_v23 = vpop.f32.mrb[25].mxu1 }
 0x36b   :  { %v942_v30 = vmul.f32 %v926_v12, %v926_v12  ;;  %v1269_v35 = vadd.f32 %v1268_v23, %v1267_v17 }
 0x36d   :  { %v968_v59 = vsel %vm2292_vm8, %v942_v30, 0.0  ;;  %801 = vst.msk [vmem:[%s2264_s3 + $0x60] sm:$0xff] %vm2293_vm9, %v1269_v35  ;;  %v927_v40 = vsub.f32 %v1269_v35, %v1704_v61  ;;  %v1270_v43 = vpop.f32.mrb[26].mxu1 }
 0x36e   :  { %v969_v51 = vadd.f32 %v968_v59, %v967_v3  ;;  %v1271_v7 = vpop.f32.mrb[27].mxu1 }
 0x36f   :  { %v943_v1 = vmul.f32 %v927_v40, %v927_v40  ;;  %v1272_v45 = vadd.f32 %v1271_v7, %v1270_v43 }
 0x371   :  { %v970_v60 = vsel %vm2294_vm10, %v943_v1, 0.0  ;;  %802 = vst.msk [vmem:[%s2264_s3 + $0x68] sm:$0xff] %vm2295_vm11, %v1272_v45  ;;  %v928_v48 = vsub.f32 %v1272_v45, %v1713_v62 }
 0x372   :  { %v971_v4 = vadd.f32 %v970_v60, %v969_v51 }
 0x373   :  { %v944_v9 = vmul.f32 %v928_v48, %v928_v48 }
 0x375   :  { %v972_v52 = vsel %vm2296_vm12, %v944_v9, 0.0  ;;  %v1273_v11 = vpop.f32.mrb[28].mxu1 }
 0x376   :  { %v1274_v61 = vpop.f32.mrb[29].mxu1  ;;  %v973_v13 = vadd.f32 %v972_v52, %v971_v4 }
 0x377   :  { %v1275_v16 = vadd.f32 %v1274_v61, %v1273_v11 }
 0x379   :  { %803 = vst.msk [vmem:[%s2264_s3 + $0x70] sm:$0xff] %vm2297_vm13, %v1275_v16  ;;  %v929_v8 = vsub.f32 %v1275_v16, %v1722_v63 }
 0x37b   :  { %v945_v19 = vmul.f32 %v929_v8, %v929_v8 }
 0x37d   :  { %v974_v22 = vsel %vm2298_vm14, %v945_v19, 0.0 }
 0x37e   :  { %v975_v53 = vadd.f32 %v974_v22, %v973_v13 }
 0x3c6   :  { %v1276_v62 = vpop.f32.mrb[30].mxu1 }
 0x3c7   :  { %v1277_v24 = vpop.f32.mrb[31].mxu1 }
 0x3c8   :  { %v1278_v27 = vadd.f32 %v1277_v24, %v1276_v62 }
 0x3ca   :  { %804 = vst.msk [vmem:[%s2264_s3 + $0x78] sm:$0xff] %vm2299_vm15, %v1278_v27  ;;  %v930_v14 = vsub.f32 %v1278_v27, %v1731_v0 }
 0x3cc   :  { %v946_v34 = vmul.f32 %v930_v14, %v930_v14 }
 0x3ce   :  { %v976_v37 = vsel %vm2300_vm1, %v946_v34, 0.0 }
 0x3cf   :  { %v977_v20 = vadd.f32 %v976_v37, %v975_v53 }
 0x3d1   :  { %978 = vadd.xlane.f32.xlu1 %v977_v20 }
 0x3d2   :  { %1391 = shalt.err (!%p1388_p4)
}
 0x3d3   :  { %s1392_s21 = scalar_lea.hbm %s2265_s4, 16 }
 0x3d4   :  { %p1393_p5 = scmp.ne.s32.totalorder %s2265_s4, %s1392_s21  ;;  %p1396_p6 = scmp.lt.u32.totalorder %s1392_s21, %s2265_s4 }
 0x3d6   :  { %p1398_p7 = pnand %p1396_p6, %p1393_p5 }
 0x3d8   :  { %1401 = shalt.err (!%p1398_p7)
}
 0x3d9   :  { %1002 = dma.vmem_to_hbm [thread:$0]  %s1000_s17, 16, %s2265_s4, [#allocation3]   ;;  %vm989_vm2 = vcmask 0  }
 0x3da   :  { %s1430_s28 = smov [#allocation4]  }
 0x3db   :  { %s1009_s29 = sshll.u32 %s1430_s28, 4  ;;  %s1010_s29 = int_to_ptr.vmem [resolvable:$true] %s1009_s29 }
 0x3dc   :  { %s1402_s6 = scalar_lea.vmem %s1010_s29, 16  ;;  %s1406_s7 = scalar_lea.vmem %s1010_s29, 32 }
 0x3dd   :  { %p1403_p8 = scmp.ne.s32.totalorder %s1010_s29, %s1402_s6  ;;  %p1407_p9 = scmp.lt.s32.totalorder %s1010_s29, %s1010_s29 }
 0x3de   :  { %p1408_p10 = scmp.lt.s32.totalorder %s1406_s7, %s1402_s6 }
 0x3e0   :  { %p1409_p11 = por %p1408_p10, %p1407_p9 }
 0x3e2   :  { %p1410_p12 = pnand %p1409_p11, %p1403_p8 }
 0x45e   :  { %v979_v63 = vpop.xlane.xlu1 %978 }
 0x45f   :  { %v980_v0 = vrot.slane %v979_v63, 4 }
 0x461   :  { %v981_v54 = vadd.f32 %v980_v0, %v979_v63 }
 0x463   :  { %v982_v39 = vrot.slane %v981_v54, 2 }
 0x465   :  { %v983_v42 = vadd.f32 %v982_v39, %v981_v54 }
 0x467   :  { %v984_v26 = vrot.slane %v983_v42, 1 }
 0x469   :  { %v985_v31 = vadd.f32 %v984_v26, %v983_v42 }
 0x46b   :  { %1359 = vpush %v985_v31 }
 0x49c   :  { %s1360_s30 = spop %1359 }
 0x49d   :  { %v988_v10 = vstv %s1360_s30 }
 0x49e   :  { %990 = vst.msk [vmem:[#allocation4] sm:$0x1] %vm989_vm2, %v988_v10 }
 0x49f   :  { %1413 = shalt.err (!%p1410_p12)
}
 0x4a0   :  { %s1414_s1 = scalar_lea.hbm %s2266_s5, 16 }
 0x4a1   :  { %p1415_p13 = scmp.ne.s32.totalorder %s2266_s5, %s1414_s1  ;;  %p1418_p0 = scmp.lt.u32.totalorder %s1414_s1, %s2266_s5 }
 0x4a3   :  { %p1420_p1 = pnand %p1418_p0, %p1415_p13 }
 0x4a5   :  { %1423 = shalt.err (!%p1420_p1)
}
 0x4a6   :  { %1012 = dma.vmem_to_hbm [thread:$0]  %s1010_s29, 16, %s2266_s5, [#allocation5]  }
 0x4a7   :  { %1424 = dma.done.wait [#allocation3], 16  }
 0x4a8   :  { %1425 = vsyncadd [#allocation3], 4294967280 }
 0x4a9   :  { %1426 = dma.done.wait [#allocation5], 16  }
 0x4aa   :  { %1427 = vsyncadd [#allocation5], 4294967280 }
 0x4ab   :  { %1021 = vsyncpa [#allocation3], 1 }
 0x4ac   :  { %1022 = vsyncpa [#allocation5], 1 }

</bundles_post_ra>
